<compile_context>
chip_gen: v6e
topology: v6e:2x2x1
jax: 0.10.0
libtpu: 0.0.40
codegen_flags: <defaults>
</compile_context>

<pallas_src>
import numpy as np
import jax
import jax.numpy as jnp
from jax.experimental import pallas as pl
from jax.experimental.pallas import tpu as pltpu


# ----------------------------------------------------------------------------
# Fused GraphLSTM kernel
# ----------------------------------------------------------------------------

def _graph_lstm_kernel(
    # int32 index column vectors (VMEM)
    src_ref, dst_ref, egid_ref, ngid_ref,
    # VMEM inputs
    ef_ref, nf_ref, gr_ref,
    eh_ref, ec_ref, nh_ref, nc_ref, gh_ref, gc_ref,
    we_ref, be_ref, wn_ref, bn_ref, wu_ref, bu_ref,
    # VMEM outputs: lane-dense [h_new | c_new] slabs
    e_out_ref, n_out_ref, u_out_ref,
    # VMEM scratch: bf16 fused-cell input slabs
    xe_ref, xn_ref, xu_ref,
):
    E, De = ef_ref.shape
    N, Dn = nf_ref.shape
    G, Du = gr_ref.shape
    H = ec_ref.shape[-1]
    bf16 = jnp.bfloat16
    f32 = jnp.float32

    def one_hot(idx_ref, depth):
        # idx_ref: (M, 1) int32  ->  (M, depth) bf16 one-hot
        idx = idx_ref[...]
        lane = jax.lax.broadcasted_iota(jnp.int32, (idx.shape[0], depth), 1)
        return jnp.where(lane == idx, 1.0, 0.0).astype(bf16)

    def gather(onehot, table_bf16):
        # (M, S) @ (S, D) -> (M, D) bf16 row gather on the MXU
        return jnp.dot(onehot, table_bf16, preferred_element_type=f32).astype(bf16)

    def seg_sum(onehot, rows_bf16):
        # scatter-add / segment sum: contract over the row axis of both
        # operands ((M,S)^T @ (M,H) -> (S,H) f32) -- one MXU pass, no serial RMW.
        return jax.lax.dot_general(onehot, rows_bf16, (((0,), (0,)), ((), ())),
                                   preferred_element_type=f32)

    def cell(x_ref, c_prev, w_ref, b_ref, out_ref):
        # one fused gate matmul, bf16 MXU operands, f32 accumulation.
        gates = jnp.dot(x_ref[...], w_ref[...],
                        preferred_element_type=f32) + b_ref[...]
        # weight/bias columns are pre-permuted at init to [i, f, o | g]:
        # sigmoid over the first contiguous 3H lanes, tanh over the last H.
        sig = jax.nn.sigmoid(gates[:, :3 * H])
        g_g = jnp.tanh(gates[:, 3 * H:])
        i_g = sig[:, 0:H]
        f_g = sig[:, H:2 * H]
        o_g = sig[:, 2 * H:3 * H]
        c_new = f_g * c_prev + i_g * g_g
        h_new = o_g * jnp.tanh(c_new)
        out_ref[:, 0:H] = h_new          # direct writes, no concat
        out_ref[:, H:2 * H] = c_new
        return h_new

    nf_bf = nf_ref[...].astype(bf16)
    gr_bf = gr_ref[...].astype(bf16)

    # one-hot matrices, each reused for gather and (transposed) segment-sum
    oh_src = one_hot(src_ref, N)        # (E, N)
    oh_dst = one_hot(dst_ref, N)        # (E, N)
    oh_eg = one_hot(egid_ref, G)        # (E, G)
    oh_ng = one_hot(ngid_ref, G)        # (N, G)

    # ------------------ edge stage ------------------------------------------
    # xh_e layout = [edge_feat | nf[src] | nf[dst] | u | h_edge], built directly
    # in the bf16 slab (no intermediate scratch, no second copy pass).
    xe_ref[:, 0:De] = ef_ref[...].astype(bf16)
    xe_ref[:, De:De + Dn] = gather(oh_src, nf_bf)
    xe_ref[:, De + Dn:De + 2 * Dn] = gather(oh_dst, nf_bf)
    xe_ref[:, De + 2 * Dn:De + 2 * Dn + Du] = gather(oh_eg, gr_bf)
    xe_ref[:, De + 2 * Dn + Du:] = eh_ref[...].astype(bf16)
    e_h = cell(xe_ref, ec_ref[...], we_ref, be_ref, e_out_ref)
    e_h_bf = e_h.astype(bf16)

    # ------ message passing (copy_edge + sum) and per-graph edge sum --------
    hagg = seg_sum(oh_dst, e_h_bf)       # (N, H) sum of incoming edge outputs
    ecomb = seg_sum(oh_eg, e_h_bf)       # (G, H) per-graph edge sum

    # ------------------ node stage ------------------------------------------
    # xh_n layout = [node_feat | h_agg | u | h_node]
    xn_ref[:, 0:Dn] = nf_bf
    xn_ref[:, Dn:Dn + H] = hagg.astype(bf16)
    xn_ref[:, Dn + H:Dn + H + Du] = gather(oh_ng, gr_bf)
    xn_ref[:, Dn + H + Du:] = nh_ref[...].astype(bf16)
    n_h = cell(xn_ref, nc_ref[...], wn_ref, bn_ref, n_out_ref)

    # ------------------ per-graph node sum -----------------------------------
    ncomb = seg_sum(oh_ng, n_h.astype(bf16))    # (G, H)

    # ------------------ global stage ------------------------------------------
    # xh_u layout = [n_comb | e_comb | g_repr | h_u]
    xu_ref[:, 0:H] = ncomb.astype(bf16)
    xu_ref[:, H:2 * H] = ecomb.astype(bf16)
    xu_ref[:, 2 * H:2 * H + Du] = gr_bf
    xu_ref[:, 2 * H + Du:] = gh_ref[...].astype(bf16)
    cell(xu_ref, gc_ref[...], wu_ref, bu_ref, u_out_ref)


# ----------------------------------------------------------------------------
# Parameter init (matches nn.LSTM: uniform(-1/sqrt(H), 1/sqrt(H)))
# Fused weight: W = [W_ih ; W_hh]^T -> (dim_in + dim_out, 4*dim_out), bf16.
# Gate columns are permuted from PyTorch's [i, f, g, o] to [i, f, o, g] so the
# kernel can apply sigmoid/tanh on two contiguous slices.
# ----------------------------------------------------------------------------

def init_lstm_params(key, dim_in, dim_out):
    k = 1.0 / np.sqrt(dim_out)
    k1, k2, k3, k4 = jax.random.split(key, 4)
    w_ih = jax.random.uniform(k1, (4 * dim_out, dim_in), jnp.float32, -k, k)
    w_hh = jax.random.uniform(k2, (4 * dim_out, dim_out), jnp.float32, -k, k)
    b_ih = jax.random.uniform(k3, (4 * dim_out,), jnp.float32, -k, k)
    b_hh = jax.random.uniform(k4, (4 * dim_out,), jnp.float32, -k, k)
    w = jnp.concatenate([w_ih, w_hh], axis=1).T      # (dim_in + dim_out, 4H)
    b = (b_ih + b_hh)[None, :]
    perm = np.concatenate([np.arange(0, 2 * dim_out),
                           np.arange(3 * dim_out, 4 * dim_out),
                           np.arange(2 * dim_out, 3 * dim_out)])
    w = w[:, perm]
    b = b[:, perm]
    return (w.astype(jnp.bfloat16), b.astype(jnp.float32))


# ----------------------------------------------------------------------------
# GraphLSTM forward (single fused pallas_call)
# ----------------------------------------------------------------------------

def graph_lstm_forward(params, graph, edge_feat, node_feat, g_repr,
                       edge_hidden, node_hidden, graph_hidden):
    """Mirrors GraphLSTM.forward for a batched graph.

    graph = (src, dst, edge_gid, node_gid, edge_counts, node_counts)
      index arrays int32, entities grouped by graph id;
      *_counts are static python tuples used for the unbatch slices.
    *_hidden = (h, c), each of shape [1, M, H] (PyTorch LSTM hidden layout).
    """
    src, dst, edge_gid, node_gid, edge_counts, node_counts = graph
    E, De = edge_feat.shape
    N, Dn = node_feat.shape
    G, Du = g_repr.shape
    H = edge_hidden[0].shape[-1]

    we, be = params['edge']
    wn, bn = params['node']
    wu, bu = params['u']
    K_e, K_n, K_u = we.shape[0], wn.shape[0], wu.shape[0]

    e_h0, e_c0 = edge_hidden[0][0], edge_hidden[1][0]
    n_h0, n_c0 = node_hidden[0][0], node_hidden[1][0]
    g_h0, g_c0 = graph_hidden[0][0], graph_hidden[1][0]

    # index column vectors for the in-kernel vectorized one-hot gathers/scatters
    src2 = src.astype(jnp.int32).reshape(E, 1)
    dst2 = dst.astype(jnp.int32).reshape(E, 1)
    egid2 = edge_gid.astype(jnp.int32).reshape(E, 1)
    ngid2 = node_gid.astype(jnp.int32).reshape(N, 1)

    inputs = (src2, dst2, egid2, ngid2,
              edge_feat, node_feat, g_repr,
              e_h0, e_c0, n_h0, n_c0, g_h0, g_c0,
              we, be, wn, bn, wu, bu)

    cell_flops = 2 * 4 * H * (E * K_e + N * K_n + G * K_u)
    gs_flops = 2 * (2 * E * N * Dn + E * G * Du + N * G * Du      # one-hot gathers
                    + E * N * H + E * G * H + N * G * H)          # segment sums
    flops = int(cell_flops + gs_flops)
    # per row: sigmoid over 3H lanes + tanh over H (g gate) + tanh over H (c_new)
    transcendentals = int(5 * H * (E + N + G))
    bytes_accessed = int(sum(int(np.prod(x.shape)) * x.dtype.itemsize for x in inputs)
                         + 4 * 2 * H * (E + N + G))

    vmem_spec = pl.BlockSpec(memory_space=pltpu.MemorySpace.VMEM)

    grid_spec = pltpu.PrefetchScalarGridSpec(
        num_scalar_prefetch=0,
        grid=(1,),
        in_specs=[vmem_spec] * len(inputs),
        out_specs=(vmem_spec, vmem_spec, vmem_spec),
        scratch_shapes=[
            pltpu.VMEM((E, K_e), jnp.bfloat16),     # xh_edge slab
            pltpu.VMEM((N, K_n), jnp.bfloat16),     # xh_node slab
            pltpu.VMEM((G, K_u), jnp.bfloat16),     # xh_u slab
        ],
    )

    e_out, n_out, u_out = pl.pallas_call(
        _graph_lstm_kernel,
        grid_spec=grid_spec,
        out_shape=(jax.ShapeDtypeStruct((E, 2 * H), jnp.float32),
                   jax.ShapeDtypeStruct((N, 2 * H), jnp.float32),
                   jax.ShapeDtypeStruct((G, 2 * H), jnp.float32)),
        compiler_params=pltpu.CompilerParams(
            dimension_semantics=("arbitrary",),
            # safe on v7x (64 MiB physical); v5e/v6e can raise toward ~100 MiB
            # for larger graphs before row-block tiling becomes necessary.
            vmem_limit_bytes=48 * 1024 * 1024),
        cost_estimate=pl.CostEstimate(flops=flops,
                                      transcendentals=transcendentals,
                                      bytes_accessed=bytes_accessed),
    )(*inputs)

    e_h, e_c = e_out[:, :H], e_out[:, H:]
    n_h, n_c = n_out[:, :H], n_out[:, H:]
    u_h, u_c = u_out[:, :H], u_out[:, H:]

    # dgl.unbatch equivalent: static contiguous per-graph slices (jit-safe).
    e_hiddens, n_hiddens = [], []
    eo = no = 0
    for ne, nn_ in zip(edge_counts, node_counts):
        e_hiddens.append((e_h[eo:eo + ne][None], e_c[eo:eo + ne][None]))
        n_hiddens.append((n_h[no:no + nn_][None], n_c[no:no + nn_][None]))
        eo += ne
        no += nn_

    u_hidden = (u_h[None], u_c[None])
    return e_h, e_hiddens, n_h, n_hiddens, u_h, u_hidden


# ----------------------------------------------------------------------------
# Pure-JAX reference (same math / same bf16 MXU-operand precision) for validation
# ----------------------------------------------------------------------------

def _reference_forward(params, graph, edge_feat, node_feat, g_repr,
                       edge_hidden, node_hidden, graph_hidden):
    src, dst, edge_gid, node_gid, _, _ = graph
    N = node_feat.shape[0]
    G = g_repr.shape[0]
    H = edge_hidden[0].shape[-1]

    def cell(x, h, c, w, b):
        xh = jnp.concatenate([x, h], axis=-1).astype(jnp.bfloat16)
        gates = jnp.dot(xh, w, preferred_element_type=jnp.float32) + b
        # params are stored in [i, f, o, g] column order
        i = jax.nn.sigmoid(gates[:, 0:H])
        f = jax.nn.sigmoid(gates[:, H:2 * H])
        o = jax.nn.sigmoid(gates[:, 2 * H:3 * H])
        g = jnp.tanh(gates[:, 3 * H:4 * H])
        c_new = f * c + i * g
        return o * jnp.tanh(c_new), c_new

    u_e = jnp.take(g_repr, edge_gid, axis=0)
    x_e = jnp.concatenate([edge_feat, jnp.take(node_feat, src, axis=0),
                           jnp.take(node_feat, dst, axis=0), u_e], axis=-1)
    e_h, e_c = cell(x_e, edge_hidden[0][0], edge_hidden[1][0], *params['edge'])

    # message / sum operands are bf16, matching the kernel's bf16 MXU segment sums
    e_hq = e_h.astype(jnp.bfloat16).astype(jnp.float32)
    h_agg = jnp.zeros((N, H), jnp.float32).at[dst].add(e_hq)
    u_n = jnp.take(g_repr, node_gid, axis=0)
    x_n = jnp.concatenate([node_feat, h_agg, u_n], axis=-1)
    n_h, n_c = cell(x_n, node_hidden[0][0], node_hidden[1][0], *params['node'])

    n_hq = n_h.astype(jnp.bfloat16).astype(jnp.float32)
    e_comb = jnp.zeros((G, H), jnp.float32).at[edge_gid].add(e_hq)
    n_comb = jnp.zeros((G, H), jnp.float32).at[node_gid].add(n_hq)
    x_u = jnp.concatenate([n_comb, e_comb, g_repr], axis=-1)
    u_h, u_c = cell(x_u, graph_hidden[0][0], graph_hidden[1][0], *params['u'])
    return e_h, e_c, n_h, n_c, u_h, u_c


# ----------------------------------------------------------------------------
# Demo
# ----------------------------------------------------------------------------

if __name__ == "__main__":
    key = jax.random.PRNGKey(0)

    dim_node = dim_edge = dim_u = 8
    dim_out = 32
    dim_in_edge = dim_edge + 2 * dim_node + dim_u   # edge_feat | src | dst | u
    dim_in_node = dim_node + dim_out + dim_u        # node_feat | h_agg | u
    dim_in_u = 2 * dim_out + dim_u                  # n_comb | e_comb | g_repr

    # synthetic batched graph: 2 graphs, 4 nodes each, bidirectional rings
    src = jnp.array([0, 1, 2, 3, 1, 2, 3, 0,
                     4, 5, 6, 7, 5, 6, 7, 4], dtype=jnp.int32)
    dst = jnp.array([1, 2, 3, 0, 0, 1, 2, 3,
                     5, 6, 7, 4, 4, 5, 6, 7], dtype=jnp.int32)
    edge_gid = jnp.array([0] * 8 + [1] * 8, dtype=jnp.int32)
    node_gid = jnp.array([0] * 4 + [1] * 4, dtype=jnp.int32)
    edge_counts, node_counts = (8, 8), (4, 4)
    G, N, E = 2, 8, 16
    graph = (src, dst, edge_gid, node_gid, edge_counts, node_counts)

    keys = jax.random.split(key, 12)
    params = {
        'edge': init_lstm_params(keys[0], dim_in_edge, dim_out),
        'node': init_lstm_params(keys[1], dim_in_node, dim_out),
        'u':    init_lstm_params(keys[2], dim_in_u, dim_out),
    }

    edge_feat = jax.random.normal(keys[3], (E, dim_edge), jnp.float32)
    node_feat = jax.random.normal(keys[4], (N, dim_node), jnp.float32)
    g_repr = jax.random.normal(keys[5], (G, dim_u), jnp.float32)
    edge_hidden = (jax.random.normal(keys[6], (1, E, dim_out), jnp.float32),
                   jax.random.normal(keys[7], (1, E, dim_out), jnp.float32))
    node_hidden = (jax.random.normal(keys[8], (1, N, dim_out), jnp.float32),
                   jax.random.normal(keys[9], (1, N, dim_out), jnp.float32))
    graph_hidden = (jax.random.normal(keys[10], (1, G, dim_out), jnp.float32),
                    jax.random.normal(keys[11], (1, G, dim_out), jnp.float32))

    (e_feat, e_hiddens, n_feat, n_hiddens,
     u_out, u_hidden) = graph_lstm_forward(params, graph, edge_feat, node_feat,
                                           g_repr, edge_hidden, node_hidden,
                                           graph_hidden)
    jax.block_until_ready((e_feat, n_feat, u_out, u_hidden))

    # numerical check vs. pure-JAX reference of the same math
    r_eh, r_ec, r_nh, r_nc, r_uh, r_uc = _reference_forward(
        params, graph, edge_feat, node_feat, g_repr,
        edge_hidden, node_hidden, graph_hidden)
    np.testing.assert_allclose(np.asarray(e_feat), np.asarray(r_eh), rtol=2e-2, atol=2e-2)
    np.testing.assert_allclose(np.asarray(n_feat), np.asarray(r_nh), rtol=2e-2, atol=2e-2)
    np.testing.assert_allclose(np.asarray(u_out), np.asarray(r_uh), rtol=2e-2, atol=2e-2)
    np.testing.assert_allclose(np.asarray(u_hidden[1][0]), np.asarray(r_uc), rtol=2e-2, atol=2e-2)

    # shape contract of the original module
    assert e_feat.shape == (E, dim_out)
    assert n_feat.shape == (N, dim_out)
    assert u_out.shape == (G, dim_out)
    assert u_hidden[0].shape == (1, G, dim_out) and u_hidden[1].shape == (1, G, dim_out)
    assert len(e_hiddens) == G and len(n_hiddens) == G
    assert e_hiddens[0][0].shape == (1, 8, dim_out)
    assert n_hiddens[0][0].shape == (1, 4, dim_out)

    print("KERNEL_OK")
</pallas_src>

<mosaic_0001>
module attributes {stable_mosaic.version = 11 : i64} {
  func.func @_graph_lstm_kernel(%arg0: i32, %arg1: memref<16x1xi32, #tpu.memory_space<vmem>>, %arg2: memref<16x1xi32, #tpu.memory_space<vmem>>, %arg3: memref<16x1xi32, #tpu.memory_space<vmem>>, %arg4: memref<8x1xi32, #tpu.memory_space<vmem>>, %arg5: memref<16x8xf32, #tpu.memory_space<vmem>>, %arg6: memref<8x8xf32, #tpu.memory_space<vmem>>, %arg7: memref<2x8xf32, #tpu.memory_space<vmem>>, %arg8: memref<16x32xf32, #tpu.memory_space<vmem>>, %arg9: memref<16x32xf32, #tpu.memory_space<vmem>>, %arg10: memref<8x32xf32, #tpu.memory_space<vmem>>, %arg11: memref<8x32xf32, #tpu.memory_space<vmem>>, %arg12: memref<2x32xf32, #tpu.memory_space<vmem>>, %arg13: memref<2x32xf32, #tpu.memory_space<vmem>>, %arg14: memref<64x128xbf16, #tpu.memory_space<vmem>>, %arg15: memref<1x128xf32, #tpu.memory_space<vmem>>, %arg16: memref<80x128xbf16, #tpu.memory_space<vmem>>, %arg17: memref<1x128xf32, #tpu.memory_space<vmem>>, %arg18: memref<104x128xbf16, #tpu.memory_space<vmem>>, %arg19: memref<1x128xf32, #tpu.memory_space<vmem>>, %arg20: memref<16x64xf32, #tpu.memory_space<vmem>>, %arg21: memref<8x64xf32, #tpu.memory_space<vmem>>, %arg22: memref<2x64xf32, #tpu.memory_space<vmem>>, %arg23: memref<16x64xbf16, #tpu.memory_space<vmem>>, %arg24: memref<8x80xbf16, #tpu.memory_space<vmem>>, %arg25: memref<2x104xbf16, #tpu.memory_space<vmem>>) attributes {dimension_semantics = [#tpu.dimension_semantics<arbitrary>], iteration_bounds = array<i64: 1>, scalar_prefetch = 0 : i64, scratch_operands = 3 : i64, tpu.core_type = #tpu.core_type<tc>, window_params = [{pipeline_mode = #tpu.pipeline_mode<synchronous>, transform_indices = @transform_0, window_bounds = array<i64: 16, 1>}, {pipeline_mode = #tpu.pipeline_mode<synchronous>, transform_indices = @transform_1, window_bounds = array<i64: 16, 1>}, {pipeline_mode = #tpu.pipeline_mode<synchronous>, transform_indices = @transform_2, window_bounds = array<i64: 16, 1>}, {pipeline_mode = #tpu.pipeline_mode<synchronous>, transform_indices = @transform_3, window_bounds = array<i64: 8, 1>}, {pipeline_mode = #tpu.pipeline_mode<synchronous>, transform_indices = @transform_4, window_bounds = array<i64: 16, 8>}, {pipeline_mode = #tpu.pipeline_mode<synchronous>, transform_indices = @transform_5, window_bounds = array<i64: 8, 8>}, {pipeline_mode = #tpu.pipeline_mode<synchronous>, transform_indices = @transform_6, window_bounds = array<i64: 2, 8>}, {pipeline_mode = #tpu.pipeline_mode<synchronous>, transform_indices = @transform_7, window_bounds = array<i64: 16, 32>}, {pipeline_mode = #tpu.pipeline_mode<synchronous>, transform_indices = @transform_8, window_bounds = array<i64: 16, 32>}, {pipeline_mode = #tpu.pipeline_mode<synchronous>, transform_indices = @transform_9, window_bounds = array<i64: 8, 32>}, {pipeline_mode = #tpu.pipeline_mode<synchronous>, transform_indices = @transform_10, window_bounds = array<i64: 8, 32>}, {pipeline_mode = #tpu.pipeline_mode<synchronous>, transform_indices = @transform_11, window_bounds = array<i64: 2, 32>}, {pipeline_mode = #tpu.pipeline_mode<synchronous>, transform_indices = @transform_12, window_bounds = array<i64: 2, 32>}, {pipeline_mode = #tpu.pipeline_mode<synchronous>, transform_indices = @transform_13, window_bounds = array<i64: 64, 128>}, {pipeline_mode = #tpu.pipeline_mode<synchronous>, transform_indices = @transform_14, window_bounds = array<i64: 1, 128>}, {pipeline_mode = #tpu.pipeline_mode<synchronous>, transform_indices = @transform_15, window_bounds = array<i64: 80, 128>}, {pipeline_mode = #tpu.pipeline_mode<synchronous>, transform_indices = @transform_16, window_bounds = array<i64: 1, 128>}, {pipeline_mode = #tpu.pipeline_mode<synchronous>, transform_indices = @transform_17, window_bounds = array<i64: 104, 128>}, {pipeline_mode = #tpu.pipeline_mode<synchronous>, transform_indices = @transform_18, window_bounds = array<i64: 1, 128>}, {pipeline_mode = #tpu.pipeline_mode<synchronous>, transform_indices = @transform_19, window_bounds = array<i64: 16, 64>}, {pipeline_mode = #tpu.pipeline_mode<synchronous>, transform_indices = @transform_20, window_bounds = array<i64: 8, 64>}, {pipeline_mode = #tpu.pipeline_mode<synchronous>, transform_indices = @transform_21, window_bounds = array<i64: 2, 64>}]} {
    %c0 = arith.constant 0 : index
    %c0_0 = arith.constant 0 : index
    %0 = vector.load %arg6[%c0, %c0_0] : memref<8x8xf32, #tpu.memory_space<vmem>>, vector<8x8xf32>
    %1 = arith.truncf %0 : vector<8x8xf32> to vector<8x8xbf16>
    %c0_1 = arith.constant 0 : index
    %c0_2 = arith.constant 0 : index
    %2 = vector.load %arg7[%c0_1, %c0_2] : memref<2x8xf32, #tpu.memory_space<vmem>>, vector<2x8xf32>
    %3 = arith.truncf %2 : vector<2x8xf32> to vector<2x8xbf16>
    %c0_3 = arith.constant 0 : index
    %c0_4 = arith.constant 0 : index
    %4 = vector.load %arg1[%c0_3, %c0_4] : memref<16x1xi32, #tpu.memory_space<vmem>>, vector<16x1xi32>
    %5 = tpu.iota {dimensions = array<i32: 1>} : vector<16x8xi32>
    %6 = vector.broadcast %4 : vector<16x1xi32> to vector<16x8xi32>
    %7 = arith.cmpi eq, %5, %6 : vector<16x8xi32>
    %cst = arith.constant 1.000000e+00 : f32
    %cst_5 = arith.constant 0.000000e+00 : f32
    %8 = vector.broadcast %cst : f32 to vector<16x8xf32>
    %9 = vector.broadcast %cst_5 : f32 to vector<16x8xf32>
    %10 = arith.select %7, %8, %9 : vector<16x8xi1>, vector<16x8xf32>
    %11 = arith.truncf %10 : vector<16x8xf32> to vector<16x8xbf16>
    %c0_6 = arith.constant 0 : index
    %c0_7 = arith.constant 0 : index
    %12 = vector.load %arg2[%c0_6, %c0_7] : memref<16x1xi32, #tpu.memory_space<vmem>>, vector<16x1xi32>
    %13 = tpu.iota {dimensions = array<i32: 1>} : vector<16x8xi32>
    %14 = vector.broadcast %12 : vector<16x1xi32> to vector<16x8xi32>
    %15 = arith.cmpi eq, %13, %14 : vector<16x8xi32>
    %cst_8 = arith.constant 1.000000e+00 : f32
    %cst_9 = arith.constant 0.000000e+00 : f32
    %16 = vector.broadcast %cst_8 : f32 to vector<16x8xf32>
    %17 = vector.broadcast %cst_9 : f32 to vector<16x8xf32>
    %18 = arith.select %15, %16, %17 : vector<16x8xi1>, vector<16x8xf32>
    %19 = arith.truncf %18 : vector<16x8xf32> to vector<16x8xbf16>
    %c0_10 = arith.constant 0 : index
    %c0_11 = arith.constant 0 : index
    %20 = vector.load %arg3[%c0_10, %c0_11] : memref<16x1xi32, #tpu.memory_space<vmem>>, vector<16x1xi32>
    %21 = tpu.iota {dimensions = array<i32: 1>} : vector<16x2xi32>
    %22 = vector.broadcast %20 : vector<16x1xi32> to vector<16x2xi32>
    %23 = arith.cmpi eq, %21, %22 : vector<16x2xi32>
    %cst_12 = arith.constant 1.000000e+00 : f32
    %cst_13 = arith.constant 0.000000e+00 : f32
    %24 = vector.broadcast %cst_12 : f32 to vector<16x2xf32>
    %25 = vector.broadcast %cst_13 : f32 to vector<16x2xf32>
    %26 = arith.select %23, %24, %25 : vector<16x2xi1>, vector<16x2xf32>
    %27 = arith.truncf %26 : vector<16x2xf32> to vector<16x2xbf16>
    %c0_14 = arith.constant 0 : index
    %c0_15 = arith.constant 0 : index
    %28 = vector.load %arg4[%c0_14, %c0_15] : memref<8x1xi32, #tpu.memory_space<vmem>>, vector<8x1xi32>
    %29 = tpu.iota {dimensions = array<i32: 1>} : vector<8x2xi32>
    %30 = vector.broadcast %28 : vector<8x1xi32> to vector<8x2xi32>
    %31 = arith.cmpi eq, %29, %30 : vector<8x2xi32>
    %cst_16 = arith.constant 1.000000e+00 : f32
    %cst_17 = arith.constant 0.000000e+00 : f32
    %32 = vector.broadcast %cst_16 : f32 to vector<8x2xf32>
    %33 = vector.broadcast %cst_17 : f32 to vector<8x2xf32>
    %34 = arith.select %31, %32, %33 : vector<8x2xi1>, vector<8x2xf32>
    %35 = arith.truncf %34 : vector<8x2xf32> to vector<8x2xbf16>
    %c0_18 = arith.constant 0 : index
    %c0_19 = arith.constant 0 : index
    %36 = vector.load %arg5[%c0_18, %c0_19] : memref<16x8xf32, #tpu.memory_space<vmem>>, vector<16x8xf32>
    %37 = arith.truncf %36 : vector<16x8xf32> to vector<16x8xbf16>
    %c0_20 = arith.constant 0 : index
    %c0_21 = arith.constant 0 : index
    %38 = vector.load %arg23[%c0_20, %c0_21] : memref<16x64xbf16, #tpu.memory_space<vmem>>, vector<16x8xbf16>
    tpu.vector_store %arg23[%c0_20, %c0_21], %37 {strides = array<i32>} : memref<16x64xbf16, #tpu.memory_space<vmem>>, vector<16x8xbf16>,
    %cst_22 = arith.constant dense<0.000000e+00> : vector<16x8xf32>
    %39 = tpu.matmul %11, %1, %cst_22 {dimension_numbers = #tpu.dot_dimension_numbers<[1], [0], [0], [1], [0, 0, 1, 1], [], []>} : vector<16x8xbf16>, vector<8x8xbf16>, vector<16x8xf32> -> vector<16x8xf32>
    %40 = arith.truncf %39 : vector<16x8xf32> to vector<16x8xbf16>
    %c0_23 = arith.constant 0 : index
    %c8 = arith.constant 8 : index
    %41 = vector.load %arg23[%c0_23, %c8] : memref<16x64xbf16, #tpu.memory_space<vmem>>, vector<16x8xbf16>
    tpu.vector_store %arg23[%c0_23, %c8], %40 {strides = array<i32>} : memref<16x64xbf16, #tpu.memory_space<vmem>>, vector<16x8xbf16>,
    %cst_24 = arith.constant dense<0.000000e+00> : vector<16x8xf32>
    %42 = tpu.matmul %19, %1, %cst_24 {dimension_numbers = #tpu.dot_dimension_numbers<[1], [0], [0], [1], [0, 0, 1, 1], [], []>} : vector<16x8xbf16>, vector<8x8xbf16>, vector<16x8xf32> -> vector<16x8xf32>
    %43 = arith.truncf %42 : vector<16x8xf32> to vector<16x8xbf16>
    %c0_25 = arith.constant 0 : index
    %c16 = arith.constant 16 : index
    %44 = vector.load %arg23[%c0_25, %c16] : memref<16x64xbf16, #tpu.memory_space<vmem>>, vector<16x8xbf16>
    tpu.vector_store %arg23[%c0_25, %c16], %43 {strides = array<i32>} : memref<16x64xbf16, #tpu.memory_space<vmem>>, vector<16x8xbf16>,
    %cst_26 = arith.constant dense<0.000000e+00> : vector<16x8xf32>
    %45 = tpu.matmul %27, %3, %cst_26 {dimension_numbers = #tpu.dot_dimension_numbers<[1], [0], [0], [1], [0, 0, 1, 1], [], []>} : vector<16x2xbf16>, vector<2x8xbf16>, vector<16x8xf32> -> vector<16x8xf32>
    %46 = arith.truncf %45 : vector<16x8xf32> to vector<16x8xbf16>
    %c0_27 = arith.constant 0 : index
    %c24 = arith.constant 24 : index
    %47 = vector.load %arg23[%c0_27, %c24] : memref<16x64xbf16, #tpu.memory_space<vmem>>, vector<16x8xbf16>
    tpu.vector_store %arg23[%c0_27, %c24], %46 {strides = array<i32>} : memref<16x64xbf16, #tpu.memory_space<vmem>>, vector<16x8xbf16>,
    %c0_28 = arith.constant 0 : index
    %c0_29 = arith.constant 0 : index
    %48 = vector.load %arg8[%c0_28, %c0_29] : memref<16x32xf32, #tpu.memory_space<vmem>>, vector<16x32xf32>
    %49 = arith.truncf %48 : vector<16x32xf32> to vector<16x32xbf16>
    %c0_30 = arith.constant 0 : index
    %c32 = arith.constant 32 : index
    %50 = vector.load %arg23[%c0_30, %c32] : memref<16x64xbf16, #tpu.memory_space<vmem>>, vector<16x32xbf16>
    tpu.vector_store %arg23[%c0_30, %c32], %49 {strides = array<i32>} : memref<16x64xbf16, #tpu.memory_space<vmem>>, vector<16x32xbf16>,
    %c0_31 = arith.constant 0 : index
    %c0_32 = arith.constant 0 : index
    %51 = vector.load %arg9[%c0_31, %c0_32] : memref<16x32xf32, #tpu.memory_space<vmem>>, vector<16x32xf32>
    %c0_33 = arith.constant 0 : index
    %c0_34 = arith.constant 0 : index
    %52 = vector.load %arg23[%c0_33, %c0_34] : memref<16x64xbf16, #tpu.memory_space<vmem>>, vector<16x64xbf16>
    %c0_35 = arith.constant 0 : index
    %c0_36 = arith.constant 0 : index
    %53 = vector.load %arg14[%c0_35, %c0_36] : memref<64x128xbf16, #tpu.memory_space<vmem>>, vector<64x128xbf16>
    %cst_37 = arith.constant dense<0.000000e+00> : vector<16x128xf32>
    %54 = tpu.matmul %52, %53, %cst_37 {dimension_numbers = #tpu.dot_dimension_numbers<[1], [0], [0], [1], [0, 0, 1, 1], [], []>} : vector<16x64xbf16>, vector<64x128xbf16>, vector<16x128xf32> -> vector<16x128xf32>
    %c0_38 = arith.constant 0 : index
    %c0_39 = arith.constant 0 : index
    %55 = vector.load %arg15[%c0_38, %c0_39] : memref<1x128xf32, #tpu.memory_space<vmem>>, vector<1x128xf32>
    %56 = vector.broadcast %55 : vector<1x128xf32> to vector<16x128xf32>
    %57 = arith.addf %54, %56 : vector<16x128xf32>
    %58 = vector.extract_strided_slice %57 {offsets = [0, 0], sizes = [16, 96], strides = [1, 1]} : vector<16x128xf32> to vector<16x96xf32>
    %59 = arith.negf %58 : vector<16x96xf32>
    %60 = math.exp %59 : vector<16x96xf32>
    %cst_40 = arith.constant 1.000000e+00 : f32
    %61 = vector.broadcast %cst_40 : f32 to vector<16x96xf32>
    %62 = arith.addf %61, %60 : vector<16x96xf32>
    %63 = arith.divf %61, %62 : vector<16x96xf32>
    %64 = vector.extract_strided_slice %57 {offsets = [0, 96], sizes = [16, 32], strides = [1, 1]} : vector<16x128xf32> to vector<16x32xf32>
    %65 = math.tanh %64 : vector<16x32xf32>
    %66 = vector.extract_strided_slice %63 {offsets = [0, 0], sizes = [16, 32], strides = [1, 1]} : vector<16x96xf32> to vector<16x32xf32>
    %67 = vector.extract_strided_slice %63 {offsets = [0, 32], sizes = [16, 32], strides = [1, 1]} : vector<16x96xf32> to vector<16x32xf32>
    %68 = vector.extract_strided_slice %63 {offsets = [0, 64], sizes = [16, 32], strides = [1, 1]} : vector<16x96xf32> to vector<16x32xf32>
    %69 = arith.mulf %67, %51 : vector<16x32xf32>
    %70 = arith.mulf %66, %65 : vector<16x32xf32>
    %71 = arith.addf %69, %70 : vector<16x32xf32>
    %72 = math.tanh %71 : vector<16x32xf32>
    %73 = arith.mulf %68, %72 : vector<16x32xf32>
    %c0_41 = arith.constant 0 : index
    %c0_42 = arith.constant 0 : index
    %74 = vector.load %arg20[%c0_41, %c0_42] : memref<16x64xf32, #tpu.memory_space<vmem>>, vector<16x32xf32>
    tpu.vector_store %arg20[%c0_41, %c0_42], %73 {strides = array<i32>} : memref<16x64xf32, #tpu.memory_space<vmem>>, vector<16x32xf32>,
    %c0_43 = arith.constant 0 : index
    %c32_44 = arith.constant 32 : index
    %75 = vector.load %arg20[%c0_43, %c32_44] : memref<16x64xf32, #tpu.memory_space<vmem>>, vector<16x32xf32>
    tpu.vector_store %arg20[%c0_43, %c32_44], %71 {strides = array<i32>} : memref<16x64xf32, #tpu.memory_space<vmem>>, vector<16x32xf32>,
    %76 = arith.truncf %73 : vector<16x32xf32> to vector<16x32xbf16>
    %cst_45 = arith.constant dense<0.000000e+00> : vector<8x32xf32>
    %77 = tpu.matmul %19, %76, %cst_45 {dimension_numbers = #tpu.dot_dimension_numbers<[0], [0], [1], [1], [0, 1, 1, 1], [], []>} : vector<16x8xbf16>, vector<16x32xbf16>, vector<8x32xf32> -> vector<8x32xf32>
    %cst_46 = arith.constant dense<0.000000e+00> : vector<2x32xf32>
    %78 = tpu.matmul %27, %76, %cst_46 {dimension_numbers = #tpu.dot_dimension_numbers<[0], [0], [1], [1], [0, 1, 1, 1], [], []>} : vector<16x2xbf16>, vector<16x32xbf16>, vector<2x32xf32> -> vector<2x32xf32>
    %c0_47 = arith.constant 0 : index
    %c0_48 = arith.constant 0 : index
    %79 = vector.load %arg24[%c0_47, %c0_48] : memref<8x80xbf16, #tpu.memory_space<vmem>>, vector<8x8xbf16>
    tpu.vector_store %arg24[%c0_47, %c0_48], %1 {strides = array<i32>} : memref<8x80xbf16, #tpu.memory_space<vmem>>, vector<8x8xbf16>,
    %80 = arith.truncf %77 : vector<8x32xf32> to vector<8x32xbf16>
    %c0_49 = arith.constant 0 : index
    %c8_50 = arith.constant 8 : index
    %81 = vector.load %arg24[%c0_49, %c8_50] : memref<8x80xbf16, #tpu.memory_space<vmem>>, vector<8x32xbf16>
    tpu.vector_store %arg24[%c0_49, %c8_50], %80 {strides = array<i32>} : memref<8x80xbf16, #tpu.memory_space<vmem>>, vector<8x32xbf16>,
    %cst_51 = arith.constant dense<0.000000e+00> : vector<8x8xf32>
    %82 = tpu.matmul %35, %3, %cst_51 {dimension_numbers = #tpu.dot_dimension_numbers<[1], [0], [0], [1], [0, 0, 1, 1], [], []>} : vector<8x2xbf16>, vector<2x8xbf16>, vector<8x8xf32> -> vector<8x8xf32>
    %83 = arith.truncf %82 : vector<8x8xf32> to vector<8x8xbf16>
    %c0_52 = arith.constant 0 : index
    %c40 = arith.constant 40 : index
    %84 = vector.load %arg24[%c0_52, %c40] : memref<8x80xbf16, #tpu.memory_space<vmem>>, vector<8x8xbf16>
    tpu.vector_store %arg24[%c0_52, %c40], %83 {strides = array<i32>} : memref<8x80xbf16, #tpu.memory_space<vmem>>, vector<8x8xbf16>,
    %c0_53 = arith.constant 0 : index
    %c0_54 = arith.constant 0 : index
    %85 = vector.load %arg10[%c0_53, %c0_54] : memref<8x32xf32, #tpu.memory_space<vmem>>, vector<8x32xf32>
    %86 = arith.truncf %85 : vector<8x32xf32> to vector<8x32xbf16>
    %c0_55 = arith.constant 0 : index
    %c48 = arith.constant 48 : index
    %87 = vector.load %arg24[%c0_55, %c48] : memref<8x80xbf16, #tpu.memory_space<vmem>>, vector<8x32xbf16>
    tpu.vector_store %arg24[%c0_55, %c48], %86 {strides = array<i32>} : memref<8x80xbf16, #tpu.memory_space<vmem>>, vector<8x32xbf16>,
    %c0_56 = arith.constant 0 : index
    %c0_57 = arith.constant 0 : index
    %88 = vector.load %arg11[%c0_56, %c0_57] : memref<8x32xf32, #tpu.memory_space<vmem>>, vector<8x32xf32>
    %c0_58 = arith.constant 0 : index
    %c0_59 = arith.constant 0 : index
    %89 = vector.load %arg24[%c0_58, %c0_59] : memref<8x80xbf16, #tpu.memory_space<vmem>>, vector<8x80xbf16>
    %c0_60 = arith.constant 0 : index
    %c0_61 = arith.constant 0 : index
    %90 = vector.load %arg16[%c0_60, %c0_61] : memref<80x128xbf16, #tpu.memory_space<vmem>>, vector<80x128xbf16>
    %cst_62 = arith.constant dense<0.000000e+00> : vector<8x128xf32>
    %91 = tpu.matmul %89, %90, %cst_62 {dimension_numbers = #tpu.dot_dimension_numbers<[1], [0], [0], [1], [0, 0, 1, 1], [], []>} : vector<8x80xbf16>, vector<80x128xbf16>, vector<8x128xf32> -> vector<8x128xf32>
    %c0_63 = arith.constant 0 : index
    %c0_64 = arith.constant 0 : index
    %92 = vector.load %arg17[%c0_63, %c0_64] : memref<1x128xf32, #tpu.memory_space<vmem>>, vector<1x128xf32>
    %93 = vector.broadcast %92 : vector<1x128xf32> to vector<8x128xf32>
    %94 = arith.addf %91, %93 : vector<8x128xf32>
    %95 = vector.extract_strided_slice %94 {offsets = [0, 0], sizes = [8, 96], strides = [1, 1]} : vector<8x128xf32> to vector<8x96xf32>
    %96 = arith.negf %95 : vector<8x96xf32>
    %97 = math.exp %96 : vector<8x96xf32>
    %cst_65 = arith.constant 1.000000e+00 : f32
    %98 = vector.broadcast %cst_65 : f32 to vector<8x96xf32>
    %99 = arith.addf %98, %97 : vector<8x96xf32>
    %100 = arith.divf %98, %99 : vector<8x96xf32>
    %101 = vector.extract_strided_slice %94 {offsets = [0, 96], sizes = [8, 32], strides = [1, 1]} : vector<8x128xf32> to vector<8x32xf32>
    %102 = math.tanh %101 : vector<8x32xf32>
    %103 = vector.extract_strided_slice %100 {offsets = [0, 0], sizes = [8, 32], strides = [1, 1]} : vector<8x96xf32> to vector<8x32xf32>
    %104 = vector.extract_strided_slice %100 {offsets = [0, 32], sizes = [8, 32], strides = [1, 1]} : vector<8x96xf32> to vector<8x32xf32>
    %105 = vector.extract_strided_slice %100 {offsets = [0, 64], sizes = [8, 32], strides = [1, 1]} : vector<8x96xf32> to vector<8x32xf32>
    %106 = arith.mulf %104, %88 : vector<8x32xf32>
    %107 = arith.mulf %103, %102 : vector<8x32xf32>
    %108 = arith.addf %106, %107 : vector<8x32xf32>
    %109 = math.tanh %108 : vector<8x32xf32>
    %110 = arith.mulf %105, %109 : vector<8x32xf32>
    %c0_66 = arith.constant 0 : index
    %c0_67 = arith.constant 0 : index
    %111 = vector.load %arg21[%c0_66, %c0_67] : memref<8x64xf32, #tpu.memory_space<vmem>>, vector<8x32xf32>
    tpu.vector_store %arg21[%c0_66, %c0_67], %110 {strides = array<i32>} : memref<8x64xf32, #tpu.memory_space<vmem>>, vector<8x32xf32>,
    %c0_68 = arith.constant 0 : index
    %c32_69 = arith.constant 32 : index
    %112 = vector.load %arg21[%c0_68, %c32_69] : memref<8x64xf32, #tpu.memory_space<vmem>>, vector<8x32xf32>
    tpu.vector_store %arg21[%c0_68, %c32_69], %108 {strides = array<i32>} : memref<8x64xf32, #tpu.memory_space<vmem>>, vector<8x32xf32>,
    %113 = arith.truncf %110 : vector<8x32xf32> to vector<8x32xbf16>
    %cst_70 = arith.constant dense<0.000000e+00> : vector<2x32xf32>
    %114 = tpu.matmul %35, %113, %cst_70 {dimension_numbers = #tpu.dot_dimension_numbers<[0], [0], [1], [1], [0, 1, 1, 1], [], []>} : vector<8x2xbf16>, vector<8x32xbf16>, vector<2x32xf32> -> vector<2x32xf32>
    %115 = arith.truncf %114 : vector<2x32xf32> to vector<2x32xbf16>
    %c0_71 = arith.constant 0 : index
    %c0_72 = arith.constant 0 : index
    %116 = vector.load %arg25[%c0_71, %c0_72] : memref<2x104xbf16, #tpu.memory_space<vmem>>, vector<2x32xbf16>
    tpu.vector_store %arg25[%c0_71, %c0_72], %115 {strides = array<i32>} : memref<2x104xbf16, #tpu.memory_space<vmem>>, vector<2x32xbf16>,
    %117 = arith.truncf %78 : vector<2x32xf32> to vector<2x32xbf16>
    %c0_73 = arith.constant 0 : index
    %c32_74 = arith.constant 32 : index
    %118 = vector.load %arg25[%c0_73, %c32_74] : memref<2x104xbf16, #tpu.memory_space<vmem>>, vector<2x32xbf16>
    tpu.vector_store %arg25[%c0_73, %c32_74], %117 {strides = array<i32>} : memref<2x104xbf16, #tpu.memory_space<vmem>>, vector<2x32xbf16>,
    %c0_75 = arith.constant 0 : index
    %c64 = arith.constant 64 : index
    %119 = vector.load %arg25[%c0_75, %c64] : memref<2x104xbf16, #tpu.memory_space<vmem>>, vector<2x8xbf16>
    tpu.vector_store %arg25[%c0_75, %c64], %3 {strides = array<i32>} : memref<2x104xbf16, #tpu.memory_space<vmem>>, vector<2x8xbf16>,
    %c0_76 = arith.constant 0 : index
    %c0_77 = arith.constant 0 : index
    %120 = vector.load %arg12[%c0_76, %c0_77] : memref<2x32xf32, #tpu.memory_space<vmem>>, vector<2x32xf32>
    %121 = arith.truncf %120 : vector<2x32xf32> to vector<2x32xbf16>
    %c0_78 = arith.constant 0 : index
    %c72 = arith.constant 72 : index
    %122 = vector.load %arg25[%c0_78, %c72] : memref<2x104xbf16, #tpu.memory_space<vmem>>, vector<2x32xbf16>
    tpu.vector_store %arg25[%c0_78, %c72], %121 {strides = array<i32>} : memref<2x104xbf16, #tpu.memory_space<vmem>>, vector<2x32xbf16>,
    %c0_79 = arith.constant 0 : index
    %c0_80 = arith.constant 0 : index
    %123 = vector.load %arg13[%c0_79, %c0_80] : memref<2x32xf32, #tpu.memory_space<vmem>>, vector<2x32xf32>
    %c0_81 = arith.constant 0 : index
    %c0_82 = arith.constant 0 : index
    %124 = vector.load %arg25[%c0_81, %c0_82] : memref<2x104xbf16, #tpu.memory_space<vmem>>, vector<2x104xbf16>
    %c0_83 = arith.constant 0 : index
    %c0_84 = arith.constant 0 : index
    %125 = vector.load %arg18[%c0_83, %c0_84] : memref<104x128xbf16, #tpu.memory_space<vmem>>, vector<104x128xbf16>
    %cst_85 = arith.constant dense<0.000000e+00> : vector<2x128xf32>
    %126 = tpu.matmul %124, %125, %cst_85 {dimension_numbers = #tpu.dot_dimension_numbers<[1], [0], [0], [1], [0, 0, 1, 1], [], []>} : vector<2x104xbf16>, vector<104x128xbf16>, vector<2x128xf32> -> vector<2x128xf32>
    %c0_86 = arith.constant 0 : index
    %c0_87 = arith.constant 0 : index
    %127 = vector.load %arg19[%c0_86, %c0_87] : memref<1x128xf32, #tpu.memory_space<vmem>>, vector<1x128xf32>
    %128 = vector.broadcast %127 : vector<1x128xf32> to vector<2x128xf32>
    %129 = arith.addf %126, %128 : vector<2x128xf32>
    %130 = vector.extract_strided_slice %129 {offsets = [0, 0], sizes = [2, 96], strides = [1, 1]} : vector<2x128xf32> to vector<2x96xf32>
    %131 = arith.negf %130 : vector<2x96xf32>
    %132 = math.exp %131 : vector<2x96xf32>
    %cst_88 = arith.constant 1.000000e+00 : f32
    %133 = vector.broadcast %cst_88 : f32 to vector<2x96xf32>
    %134 = arith.addf %133, %132 : vector<2x96xf32>
    %135 = arith.divf %133, %134 : vector<2x96xf32>
    %136 = vector.extract_strided_slice %129 {offsets = [0, 96], sizes = [2, 32], strides = [1, 1]} : vector<2x128xf32> to vector<2x32xf32>
    %137 = math.tanh %136 : vector<2x32xf32>
    %138 = vector.extract_strided_slice %135 {offsets = [0, 0], sizes = [2, 32], strides = [1, 1]} : vector<2x96xf32> to vector<2x32xf32>
    %139 = vector.extract_strided_slice %135 {offsets = [0, 32], sizes = [2, 32], strides = [1, 1]} : vector<2x96xf32> to vector<2x32xf32>
    %140 = vector.extract_strided_slice %135 {offsets = [0, 64], sizes = [2, 32], strides = [1, 1]} : vector<2x96xf32> to vector<2x32xf32>
    %141 = arith.mulf %139, %123 : vector<2x32xf32>
    %142 = arith.mulf %138, %137 : vector<2x32xf32>
    %143 = arith.addf %141, %142 : vector<2x32xf32>
    %144 = math.tanh %143 : vector<2x32xf32>
    %145 = arith.mulf %140, %144 : vector<2x32xf32>
    %c0_89 = arith.constant 0 : index
    %c0_90 = arith.constant 0 : index
    %146 = vector.load %arg22[%c0_89, %c0_90] : memref<2x64xf32, #tpu.memory_space<vmem>>, vector<2x32xf32>
    tpu.vector_store %arg22[%c0_89, %c0_90], %145 {strides = array<i32>} : memref<2x64xf32, #tpu.memory_space<vmem>>, vector<2x32xf32>,
    %c0_91 = arith.constant 0 : index
    %c32_92 = arith.constant 32 : index
    %147 = vector.load %arg22[%c0_91, %c32_92] : memref<2x64xf32, #tpu.memory_space<vmem>>, vector<2x32xf32>
    tpu.vector_store %arg22[%c0_91, %c32_92], %143 {strides = array<i32>} : memref<2x64xf32, #tpu.memory_space<vmem>>, vector<2x32xf32>,
    return
  }
  func.func @transform_0(%arg0: i32) -> (i32, i32) {
    %c0_i32 = arith.constant 0 : i32
    %c0_i32_0 = arith.constant 0 : i32
    %c0_i32_1 = arith.constant 0 : i32
    return %c0_i32, %c0_i32_0 : i32, i32
  }
  func.func @transform_1(%arg0: i32) -> (i32, i32) {
    %c0_i32 = arith.constant 0 : i32
    %c0_i32_0 = arith.constant 0 : i32
    %c0_i32_1 = arith.constant 0 : i32
    return %c0_i32, %c0_i32_0 : i32, i32
  }
  func.func @transform_2(%arg0: i32) -> (i32, i32) {
    %c0_i32 = arith.constant 0 : i32
    %c0_i32_0 = arith.constant 0 : i32
    %c0_i32_1 = arith.constant 0 : i32
    return %c0_i32, %c0_i32_0 : i32, i32
  }
  func.func @transform_3(%arg0: i32) -> (i32, i32) {
    %c0_i32 = arith.constant 0 : i32
    %c0_i32_0 = arith.constant 0 : i32
    %c0_i32_1 = arith.constant 0 : i32
    return %c0_i32, %c0_i32_0 : i32, i32
  }
  func.func @transform_4(%arg0: i32) -> (i32, i32) {
    %c0_i32 = arith.constant 0 : i32
    %c0_i32_0 = arith.constant 0 : i32
    %c0_i32_1 = arith.constant 0 : i32
    return %c0_i32, %c0_i32_0 : i32, i32
  }
  func.func @transform_5(%arg0: i32) -> (i32, i32) {
    %c0_i32 = arith.constant 0 : i32
    %c0_i32_0 = arith.constant 0 : i32
    %c0_i32_1 = arith.constant 0 : i32
    return %c0_i32, %c0_i32_0 : i32, i32
  }
  func.func @transform_6(%arg0: i32) -> (i32, i32) {
    %c0_i32 = arith.constant 0 : i32
    %c0_i32_0 = arith.constant 0 : i32
    %c0_i32_1 = arith.constant 0 : i32
    return %c0_i32, %c0_i32_0 : i32, i32
  }
  func.func @transform_7(%arg0: i32) -> (i32, i32) {
    %c0_i32 = arith.constant 0 : i32
    %c0_i32_0 = arith.constant 0 : i32
    %c0_i32_1 = arith.constant 0 : i32
    return %c0_i32, %c0_i32_0 : i32, i32
  }
  func.func @transform_8(%arg0: i32) -> (i32, i32) {
    %c0_i32 = arith.constant 0 : i32
    %c0_i32_0 = arith.constant 0 : i32
    %c0_i32_1 = arith.constant 0 : i32
    return %c0_i32, %c0_i32_0 : i32, i32
  }
  func.func @transform_9(%arg0: i32) -> (i32, i32) {
    %c0_i32 = arith.constant 0 : i32
    %c0_i32_0 = arith.constant 0 : i32
    %c0_i32_1 = arith.constant 0 : i32
    return %c0_i32, %c0_i32_0 : i32, i32
  }
  func.func @transform_10(%arg0: i32) -> (i32, i32) {
    %c0_i32 = arith.constant 0 : i32
    %c0_i32_0 = arith.constant 0 : i32
    %c0_i32_1 = arith.constant 0 : i32
    return %c0_i32, %c0_i32_0 : i32, i32
  }
  func.func @transform_11(%arg0: i32) -> (i32, i32) {
    %c0_i32 = arith.constant 0 : i32
    %c0_i32_0 = arith.constant 0 : i32
    %c0_i32_1 = arith.constant 0 : i32
    return %c0_i32, %c0_i32_0 : i32, i32
  }
  func.func @transform_12(%arg0: i32) -> (i32, i32) {
    %c0_i32 = arith.constant 0 : i32
    %c0_i32_0 = arith.constant 0 : i32
    %c0_i32_1 = arith.constant 0 : i32
    return %c0_i32, %c0_i32_0 : i32, i32
  }
  func.func @transform_13(%arg0: i32) -> (i32, i32) {
    %c0_i32 = arith.constant 0 : i32
    %c0_i32_0 = arith.constant 0 : i32
    %c0_i32_1 = arith.constant 0 : i32
    return %c0_i32, %c0_i32_0 : i32, i32
  }
  func.func @transform_14(%arg0: i32) -> (i32, i32) {
    %c0_i32 = arith.constant 0 : i32
    %c0_i32_0 = arith.constant 0 : i32
    %c0_i32_1 = arith.constant 0 : i32
    return %c0_i32, %c0_i32_0 : i32, i32
  }
  func.func @transform_15(%arg0: i32) -> (i32, i32) {
    %c0_i32 = arith.constant 0 : i32
    %c0_i32_0 = arith.constant 0 : i32
    %c0_i32_1 = arith.constant 0 : i32
    return %c0_i32, %c0_i32_0 : i32, i32
  }
  func.func @transform_16(%arg0: i32) -> (i32, i32) {
    %c0_i32 = arith.constant 0 : i32
    %c0_i32_0 = arith.constant 0 : i32
    %c0_i32_1 = arith.constant 0 : i32
    return %c0_i32, %c0_i32_0 : i32, i32
  }
  func.func @transform_17(%arg0: i32) -> (i32, i32) {
    %c0_i32 = arith.constant 0 : i32
    %c0_i32_0 = arith.constant 0 : i32
    %c0_i32_1 = arith.constant 0 : i32
    return %c0_i32, %c0_i32_0 : i32, i32
  }
  func.func @transform_18(%arg0: i32) -> (i32, i32) {
    %c0_i32 = arith.constant 0 : i32
    %c0_i32_0 = arith.constant 0 : i32
    %c0_i32_1 = arith.constant 0 : i32
    return %c0_i32, %c0_i32_0 : i32, i32
  }
  func.func @transform_19(%arg0: i32) -> (i32, i32) {
    %c0_i32 = arith.constant 0 : i32
    %c0_i32_0 = arith.constant 0 : i32
    %c0_i32_1 = arith.constant 0 : i32
    return %c0_i32, %c0_i32_0 : i32, i32
  }
  func.func @transform_20(%arg0: i32) -> (i32, i32) {
    %c0_i32 = arith.constant 0 : i32
    %c0_i32_0 = arith.constant 0 : i32
    %c0_i32_1 = arith.constant 0 : i32
    return %c0_i32, %c0_i32_0 : i32, i32
  }
  func.func @transform_21(%arg0: i32) -> (i32, i32) {
    %c0_i32 = arith.constant 0 : i32
    %c0_i32_0 = arith.constant 0 : i32
    %c0_i32_1 = arith.constant 0 : i32
    return %c0_i32, %c0_i32_0 : i32, i32
  }
}

</mosaic_0001>

<bundles_post_ra>
// kernel: tpu_custom_call.1
= control target key start
LH: loop header
LB: loop body
LE: loop exit
PB: predicated region body
PF: predicated region fallthrough
CT: control target
= control target key end

     0   :  { %s2108_s0 = inlined_call_operand.vmem [shape: s32[16,1], index: 0, kind: input, shape index: {}]   ;;  %s2109_s1 = inlined_call_operand.vmem [shape: s32[16,1], index: 1, kind: input, shape index: {}]   ;;  %s2110_s2 = inlined_call_operand.vmem [shape: s32[16,1], index: 2, kind: input, shape index: {}]   ;;  %s2111_s3 = inlined_call_operand.vmem [shape: s32[8,1], index: 3, kind: input, shape index: {}]   ;;  %s2112_s4 = inlined_call_operand.vmem [shape: f32[16,8], index: 4, kind: input, shape index: {}]   ;;  %s2113_s5 = inlined_call_operand.hbm [shape: f32[8,8], index: 5, kind: input, shape index: {}]   ;;  %s2114_s6 = inlined_call_operand.vmem [shape: f32[2,8], index: 6, kind: input, shape index: {}]   ;;  %s2115_s7 = inlined_call_operand.hbm [shape: f32[16,32], index: 7, kind: input, shape index: {}]   ;;  %s2116_s8 = inlined_call_operand.hbm [shape: f32[16,32], index: 8, kind: input, shape index: {}]   ;;  %s2117_s9 = inlined_call_operand.hbm [shape: f32[8,32], index: 9, kind: input, shape index: {}]   ;;  %s2118_s10 = inlined_call_operand.hbm [shape: f32[8,32], index: 10, kind: input, shape index: {}]   ;;  %s2119_s11 = inlined_call_operand.vmem [shape: f32[2,32], index: 11, kind: input, shape index: {}]   ;;  %s2120_s12 = inlined_call_operand.hbm [shape: f32[2,32], index: 12, kind: input, shape index: {}]   ;;  %s2121_s13 = inlined_call_operand.hbm [shape: bf16[64,128], index: 13, kind: input, shape index: {}]   ;;  %s2122_s14 = inlined_call_operand.vmem [shape: f32[1,128], index: 14, kind: input, shape index: {}]   ;;  %s2123_s15 = inlined_call_operand.vmem [shape: bf16[80,128], index: 15, kind: input, shape index: {}]   ;;  %s2124_s16 = inlined_call_operand.vmem [shape: f32[1,128], index: 16, kind: input, shape index: {}]   ;;  %s2125_s17 = inlined_call_operand.vmem [shape: bf16[104,128], index: 17, kind: input, shape index: {}]   ;;  %s2126_s18 = inlined_call_operand.vmem [shape: f32[1,128], index: 18, kind: input, shape index: {}]   ;;  %s2127_s19 = inlined_call_operand.hbm [shape: f32[16,64], index: 19, kind: output, shape index: {0}]   ;;  %s2128_s20 = inlined_call_operand.hbm [shape: f32[8,64], index: 20, kind: output, shape index: {1}]   ;;  %s2129_s21 = inlined_call_operand.hbm [shape: f32[2,64], index: 21, kind: output, shape index: {2}]  }
   0x1   :  { %2134 = sst [smem:[#allocation27_spill]] %s2108_s0 }
   0x2   :  { %2135 = sst [smem:[#allocation28_spill]] %s2109_s1 }
   0x3   :  { %2136 = sst [smem:[#allocation29_spill]] %s2110_s2 }
   0x4   :  { %2137 = sst [smem:[#allocation30_spill]] %s2111_s3 }
   0x5   :  { %2138 = sst [smem:[#allocation31_spill]] %s2112_s4 }
   0x6   :  { %2139 = sst [smem:[#allocation32_spill]] %s2113_s5 }
   0x7   :  { %27 = vsyncpa [#allocation6], 0 }
   0x8   :  { %28 = vsyncpa [#allocation9], 0 }
   0x9   :  { %29 = vsyncpa [#allocation12], 0 }
   0xa   :  { %30 = vsyncpa [#allocation15], 0 }
   0xb   :  { %31 = vsyncpa [#allocation7], 0 }
   0xc   :  { %32 = vsyncpa [#allocation19], 0  ;;  %s1699_s2 = smov [#allocation8]  }
   0xd   :  { %s60_s25 = sshll.u32 %s1699_s2, 4  ;;  %s61_s25 = int_to_ptr.vmem [resolvable:$true] %s60_s25 }
   0xe   :  { %s1495_s26 = scalar_lea.vmem %s61_s25, 256  ;;  %p1500_p1 = scmp.lt.s32.totalorder %s61_s25, %s61_s25 }
   0xf   :  { %p1496_p0 = scmp.ne.s32.totalorder %s61_s25, %s1495_s26  ;;  %p1501_p2 = scmp.lt.s32.totalorder %s1495_s26, %s1495_s26 }
  0x11   :  { %p1502_p3 = por %p1501_p2, %p1500_p1 }
  0x13   :  { %p1503_p4 = pnand %p1502_p3, %p1496_p0 }
  0x15   :  { %1506 = shalt.err (!%p1503_p4)
}
  0x16   :  { %s1700_s27 = smov 128   ;;  %s1701_s3 = smov 8  }
  0x17   :  { %66 = dma.hbm_to_vmem [thread:$0]  %s2115_s7, 256, %s61_s25, [#allocation9], %s1700_s27, %s1700_s27, %s1701_s3  }
  0x18   :  { %s1702_s0 = smov [#allocation11]   ;;  %s1703_s30 = smov [#allocation14]  }
  0x19   :  { %s85_s4 = sshll.u32 %s1702_s0, 4  ;;  %s107_s5 = sshll.u32 %s1703_s30, 4  ;;  %s86_s4 = int_to_ptr.vmem [resolvable:$true] %s85_s4  ;;  %s108_s5 = int_to_ptr.vmem [resolvable:$true] %s107_s5 }
  0x1a   :  { %s1515_s22 = scalar_lea.vmem %s86_s4, 128  ;;  %p1520_p6 = scmp.lt.s32.totalorder %s86_s4, %s86_s4 }
  0x1b   :  { %p1516_p5 = scmp.ne.s32.totalorder %s86_s4, %s1515_s22  ;;  %p1521_p7 = scmp.lt.s32.totalorder %s1515_s22, %s1515_s22 }
  0x1d   :  { %p1522_p8 = por %p1521_p7, %p1520_p6 }
  0x1f   :  { %p1523_p9 = pnand %p1522_p8, %p1516_p5 }
  0x21   :  { %1526 = shalt.err (!%p1523_p9)
}
  0x22   :  { %88 = dma.hbm_to_vmem [thread:$0]  %s2117_s9, 128, %s86_s4, [#allocation12]  }
  0x23   :  { %s1535_s24 = scalar_lea.vmem %s108_s5, 32  ;;  %p1540_p11 = scmp.lt.s32.totalorder %s108_s5, %s108_s5 }
  0x24   :  { %p1536_p10 = scmp.ne.s32.totalorder %s108_s5, %s1535_s24  ;;  %p1541_p12 = scmp.lt.s32.totalorder %s1535_s24, %s1535_s24 }
  0x26   :  { %p1542_p13 = por %p1541_p12, %p1540_p11 }
  0x28   :  { %p1543_p0 = pnand %p1542_p13, %p1536_p10 }
  0x2a   :  { %1546 = shalt.err (!%p1543_p0)
}
  0x2b   :  { %110 = dma.hbm_to_vmem [thread:$0]  %s2120_s12, 32, %s108_s5, [#allocation15]  }
  0x2c   :  { %s1704_s25 = smov [#allocation5]   ;;  %s1705_s28 = smov [#allocation10]  }
  0x2d   :  { %s49_s26 = sshll.u32 %s1704_s25, 4  ;;  %s72_s29 = sshll.u32 %s1705_s28, 4  ;;  %s50_s26 = int_to_ptr.vmem [resolvable:$true] %s49_s26  ;;  %s73_s29 = int_to_ptr.vmem [resolvable:$true] %s72_s29 }
  0x2e   :  { %s1555_s0 = scalar_lea.vmem %s50_s26, 128  ;;  %p1560_p2 = scmp.lt.s32.totalorder %s50_s26, %s50_s26 }
  0x2f   :  { %p1556_p1 = scmp.ne.s32.totalorder %s50_s26, %s1555_s0  ;;  %p1561_p3 = scmp.lt.s32.totalorder %s1555_s0, %s1555_s0 }
  0x31   :  { %p1562_p4 = por %p1561_p3, %p1560_p2 }
  0x33   :  { %p1563_p5 = pnand %p1562_p4, %p1556_p1 }
  0x35   :  { %1566 = shalt.err (!%p1563_p5)
}
  0x36   :  { %s2140_s30 = sld [smem:[#allocation32_spill]]  ;;  %s1575_s22 = scalar_lea.vmem %s73_s29, 256 }
  0x37   :  { %p1576_p6 = scmp.ne.s32.totalorder %s73_s29, %s1575_s22  ;;  %p1580_p7 = scmp.lt.s32.totalorder %s73_s29, %s73_s29 }
  0x38   :  { %p1581_p8 = scmp.lt.s32.totalorder %s1575_s22, %s1575_s22 }
  0x3a   :  { %p1582_p9 = por %p1581_p8, %p1580_p7 }
  0x3c   :  { %52 = dma.hbm_to_vmem [thread:$0]  %s2140_s30, 128, %s50_s26, [#allocation6]  }
  0x3d   :  { %p1583_p10 = pnand %p1582_p9, %p1576_p6 }
  0x3f   :  { %1586 = shalt.err (!%p1583_p10)
}
  0x40   :  { %78 = dma.hbm_to_vmem [thread:$0]  %s2116_s8, 256, %s73_s29, [#allocation9], %s1700_s27, %s1700_s27, %s1701_s3  }
  0x41   :  { %s1706_s23 = smov [#allocation13]   ;;  %s1707_s24 = smov [#allocation16]  }
  0x42   :  { %s95_s1 = sshll.u32 %s1706_s23, 4  ;;  %s116_s7 = sshll.u32 %s1707_s24, 4  ;;  %s96_s1 = int_to_ptr.vmem [resolvable:$true] %s95_s1  ;;  %s117_s7 = int_to_ptr.vmem [resolvable:$true] %s116_s7 }
  0x43   :  { %s1595_s2 = scalar_lea.vmem %s96_s1, 128  ;;  %p1600_p12 = scmp.lt.s32.totalorder %s96_s1, %s96_s1 }
  0x44   :  { %p1596_p11 = scmp.ne.s32.totalorder %s96_s1, %s1595_s2  ;;  %p1601_p13 = scmp.lt.s32.totalorder %s1595_s2, %s1595_s2 }
  0x46   :  { %p1602_p0 = por %p1601_p13, %p1600_p12 }
  0x48   :  { %p1603_p1 = pnand %p1602_p0, %p1596_p11 }
  0x4a   :  { %1606 = shalt.err (!%p1603_p1)
}
  0x4b   :  { %98 = dma.hbm_to_vmem [thread:$0]  %s2118_s10, 128, %s96_s1, [#allocation12]  }
  0x4c   :  { %s1615_s28 = scalar_lea.vmem %s117_s7, 512  ;;  %p1620_p3 = scmp.lt.s32.totalorder %s117_s7, %s117_s7 }
  0x4d   :  { %p1616_p2 = scmp.ne.s32.totalorder %s117_s7, %s1615_s28  ;;  %p1621_p4 = scmp.lt.s32.totalorder %s1615_s28, %s1615_s28 }
  0x4f   :  { %p1622_p5 = por %p1621_p4, %p1620_p3 }
  0x51   :  { %p1623_p6 = pnand %p1622_p5, %p1616_p2 }
  0x53   :  { %1626 = shalt.err (!%p1623_p6)
}
  0x54   :  { %s1708_s8 = smov 64   ;;  %s1709_s29 = smov 4  }
  0x55   :  { %122 = dma.hbm_to_vmem [thread:$0]  %s2121_s13, 512, %s117_s7, [#allocation15], %s1708_s8, %s1708_s8, %s1709_s29  }
  0x56   :  { %1687 = dma.done.wait [#allocation6], 128  }
  0x57   :  { %1688 = vsyncadd [#allocation6], 4294967168 }
  0x58   :  { %1689 = dma.done.wait [#allocation9], 512  }
  0x59   :  { %1690 = vsyncadd [#allocation9], 4294966784 }
  0x5a   :  { %1691 = dma.done.wait [#allocation12], 256  }
  0x5b   :  { %1692 = vsyncadd [#allocation12], 4294967040 }
  0x5c   :  { %1693 = dma.done.wait [#allocation15], 544  }
  0x5d   :  { %1694 = vsyncadd [#allocation15], 4294966752  ;;  %v1710_v0 = vmov 0   ;;  %v1711_v1 = vmov 0.0   ;;  %s2141_s30 = sld [smem:[#allocation28_spill]]  ;;  %v155_v6 = vld [vmem:[#allocation5] sm:$0xff]  ;;  %v161_v11 = vlaneseq }
  0x5e   :  { %1437 = vset.pattern.permute.xlu1 %v1710_v0  ;;  %1436 = vset.pattern.permute.xlu0 %v1710_v0  ;;  %s2142_s12 = sld [smem:[#allocation27_spill]]  ;;  %vm224_vm0 = vcmask 1043456   ;;  %v156_v7 = vpack.c.bf16 %v155_v6, %v155_v6  ;;  %vm217_vm1 = vcmask 60416   ;;  %vm1712_vm2 = vmmov 0   ;;  %v157_v15 = vld [vmem:[%s2114_s6] sm:$0x3] }
  0x5f   :  { %1326 = vmatprep.subr.bf16.mxu0 %v1711_v1  ;;  %1332 = vmatprep.subr.bf16.mxu1 %v1711_v1  ;;  %s2143_s25 = sld [smem:[#allocation29_spill]]  ;;  %v1891_v12 = vand.u32 127, %v161_v11  ;;  %v1898_v16 = vpack.c.bf16 %v157_v15, %v157_v15  ;;  %vm347_vm5 = vcmask 1040384   ;;  %vm220_vm8 = vcmask 64512   ;;  %v1438_v35 = vld [vmem:[#allocation16 + $0x18] sm:$0xff]   ;;  %v1439_v41 = vld [vmem:[#allocation16 + $0x10] sm:$0xff]  }
  0x60   :  { %1328 = vmatprep.mubr.msk.bf16.mxu0 %vm1712_vm2, %v1711_v1  ;;  %1334 = vmatprep.mubr.msk.bf16.mxu1 %vm1712_vm2, %v1711_v1  ;;  %v226_v9 = vsel %vm224_vm0, %v156_v7, 0  ;;  %711 = vst.msk [vmem:[#allocation3] sm:$0xf] %vm217_vm1, %v156_v7  ;;  %vm343_vm11 = vcmask 15360   ;;  %s2144_s10 = sld [smem:[#allocation31_spill]]  ;;  %v1440_v48 = vld [vmem:[#allocation16 + $0x8] sm:$0xff]  }
  0x61   :  { %1327 = vmatpush3.bf16.msra.mxu0 %v226_v9  ;;  %1333 = vmatpush3.bf16.msra.mxu1 %v226_v9  ;;  %v1909_v25 = vsel %vm347_vm5, %v1898_v16, 0  ;;  %s1713_s13 = smov 16   ;;  %v407_v50 = vld [vmem:[#allocation8] sm:$0xff]  ;;  %v1441_v51 = vld [vmem:[#allocation16] sm:$0xff]   ;;  %s1714_s22 = smov 24   ;;  %v408_v57 = vld [vmem:[#allocation8 + $0x8] sm:$0xff] }
  0x62   :  { %1338 = vmatprep.subr.bf16.mxu0 %v1711_v1  ;;  %1344 = vmatprep.subr.bf16.mxu1 %v1711_v1  ;;  %v1288_v55 = vpack.c.bf16 %v407_v50, %v407_v50  ;;  %v1289_v60 = vpack.c.bf16 %v408_v57, %v408_v57  ;;  %vm281_vm12 = vcmask 126016   ;;  %vm340_vm13 = vcmask 191616   ;;  %v1246_v7 = vld [vmem:[%s2122_s14] ss:$0 sm:$0xff]  ;;  %s2145_s24 = sld [smem:[#allocation30_spill]]  ;;  %s1716_s0 = smov 48  }
  0x63   :  { %v174_v2 = vld [vmem:[%s2141_s30] sm:$0xff]  ;;  %v175_v4 = vld [vmem:[%s2141_s30 + $0x8] sm:$0xff]  ;;  %vm404_vm14 = vcmask 257216   ;;  %vm421_vm15 = vcmask 519424   ;;  %s1717_s30 = smov 40   ;;  %vm719_vm5 = vcmask 322624  }
  0x64   :  { %v159_v3 = vld [vmem:[%s2142_s12] sm:$0xff]  ;;  %177 = vperm.xlu1 %1437, %v174_v2   ;;  %v160_v5 = vld [vmem:[%s2142_s12 + $0x8] sm:$0xff]  ;;  %s1715_s12 = smov 32   ;;  %s1719_s5 = smov 72  }
  0x65   :  { %164 = vperm.xlu0 %1436, %v159_v3   ;;  %v188_v8 = vld [vmem:[%s2143_s25 + $0x8] sm:$0xff]  ;;  %v187_v10 = vld [vmem:[%s2143_s25] sm:$0xff] }
  0x66   :  { %v207_v31 = vld [vmem:[%s2144_s10] sm:$0xff]  ;;  %v208_v33 = vld [vmem:[%s2144_s10 + $0x8] sm:$0xff] }
  0x67   :  { %v1280_v32 = vpack.c.bf16 %v207_v31, %v207_v31  ;;  %v1281_v34 = vpack.c.bf16 %v208_v33, %v208_v33 }
  0x68   :  { %180 = vperm.xlu1 %1437, %v175_v4  }
  0x69   :  { %167 = vperm.xlu0 %1436, %v160_v5   ;;  %218 = vst.msk [vmem:[#allocation2] sm:$0xf] %vm217_vm1, %v1280_v32  ;;  %219 = vst.msk [vmem:[#allocation2 + $0x4] sm:$0xf] %vm217_vm1, %v1281_v34  ;;  %vm472_vm1 = vcmask 523264  }
  0x6c   :  { %193 = vperm.xlu1 %1437, %v188_v8  }
  0x6d   :  { %190 = vperm.xlu0 %1436, %v187_v10  }
  0xdf   :  { %v178_v13 = vpop.permute.xlu1 %177 }
  0xe0   :  { %v165_v14 = vpop.permute.xlu0 %164  ;;  %vm182_vm3 = vcmp.eq.s32.totalorder %v1891_v12, %v178_v13 }
  0xe1   :  { %vm169_vm4 = vcmp.eq.s32.totalorder %v1891_v12, %v165_v14  ;;  %v184_v17 = vsel %vm182_vm3, 1.0, %v1711_v1  ;;  %vm608_vm3 = vcmask 130048  }
  0xe2   :  { %v171_v20 = vsel %vm169_vm4, 1.0, %v1711_v1 }
  0xe3   :  { %v181_v18 = vpop.permute.xlu1 %180 }
  0xe4   :  { %v168_v19 = vpop.permute.xlu0 %167  ;;  %vm183_vm6 = vcmp.eq.s32.totalorder %v1891_v12, %v181_v18  ;;  %v424_v18 = vld [vmem:[#allocation10] sm:$0xff] }
  0xe5   :  { %vm170_vm7 = vcmp.eq.s32.totalorder %v1891_v12, %v168_v19  ;;  %v185_v21 = vsel %vm183_vm6, 1.0, %v1711_v1  ;;  %vm771_vm6 = vcmask 388416  }
  0xe6   :  { %v172_v22 = vsel %vm170_vm7, 1.0, %v1711_v1  ;;  %v1906_v23 = vpack.c.bf16 %v185_v21, %v184_v17  ;;  %vm781_vm7 = vcmask 650624  }
  0xe7   :  { %v173_v24 = vpack.c.bf16 %v172_v22, %v171_v20  ;;  %v194_v26 = vpop.permute.xlu1 %193  ;;  %v425_v20 = vld [vmem:[#allocation10 + $0x8] sm:$0xff] }
  0xe8   :  { %v191_v27 = vpop.permute.xlu0 %190  ;;  %vm196_vm9 = vcmp.eq.s32.totalorder %v1891_v12, %v194_v26  ;;  %1335 = vmatmul.mubr.msk.bf16.vlgmr.msra.gmra.mxu1 %vm220_vm8, %v1906_v23 }
  0xe9   :  { %vm195_vm10 = vcmp.eq.s32.totalorder %v1891_v12, %v191_v27  ;;  %1329 = vmatmul.mubr.msk.bf16.vlgmr.msra.gmra.mxu0 %vm220_vm8, %v173_v24  ;;  %1352 = vmatprep.mubr.msk.bf16.mxu1 %vm1712_vm2, %v1711_v1  ;;  %v198_v28 = vsel %vm196_vm9, 1.0, %v1711_v1  ;;  %vm832_vm9 = vcmask 654336  }
  0xea   :  { %1339 = vmatpush3.bf16.msra.mxu0 %v1909_v25  ;;  %1340 = vmatprep.mubr.msk.bf16.mxu0 %vm1712_vm2, %v1711_v1  ;;  %v197_v29 = vsel %vm195_vm10, 1.0, %v1711_v1  ;;  %vm581_vm10 = vcmask 261120  }
  0xeb   :  { %1356 = vmatprep.subr.bf16.mxu0 %v1711_v1  ;;  %v1924_v30 = vpack.c.bf16 %v198_v28, %v197_v29  ;;  %1345 = vmatpush3.bf16.msra.mxu1 %v1438_v35 }
  0xec   :  { %1346 = vmatprep.subr.bf16.mxu1 %v1711_v1 }
  0xef   :  { %1347 = vmatpush3.bf16.msra.mxu1 %v1439_v41 }
  0xf0   :  { %1348 = vmatprep.subr.bf16.mxu1 %v1711_v1 }
  0xf1   :  { %1341 = vmatmul.mubr.msk.bf16.vlgmr.msra.gmra.mxu0 %vm343_vm11, %v1924_v30 }
  0xf2   :  { %1358 = vmatprep.mubr.msk.bf16.mxu0 %vm1712_vm2, %v1711_v1 }
  0xf3   :  { %1349 = vmatpush3.bf16.msra.mxu1 %v1440_v48 }
  0xf4   :  { %1350 = vmatprep.subr.bf16.mxu1 %v1711_v1 }
  0xf7   :  { %1351 = vmatpush3.bf16.msra.mxu1 %v1441_v51 }
  0xf8   :  { %1388 = vmatprep.subr.bf16.mxu1 %v1711_v1 }
 0x1a8   :  { %v321_v37 = vpop.f32.mrf.mxu1 }
 0x1a9   :  { %v262_v36 = vpop.f32.mrf.mxu0  ;;  %v1284_v44 = vpack.c.bf16 %v321_v37, %v321_v37 }
 0x1aa   :  { %v1282_v38 = vpack.c.bf16 %v262_v36, %v262_v36  ;;  %v1336_v40 = vpop.f32.mrf.mxu1 }
 0x1ab   :  { %v1330_v39 = vpop.f32.mrf.mxu0 }
 0x1ac   :  { %275 = vrot.lane.b32.xlu0 %v1282_v38, %s1701_s3  ;;  %v324_v43 = vpop.f32.mrf.mxu1 }
 0x1ad   :  { %v265_v42 = vpop.f32.mrf.mxu0  ;;  %v1285_v52 = vpack.c.bf16 %v324_v43, %v324_v43 }
 0x1ae   :  { %v1283_v45 = vpack.c.bf16 %v265_v42, %v265_v42  ;;  %v1337_v47 = vpop.f32.mrf.mxu1 }
 0x1af   :  { %v1331_v46 = vpop.f32.mrf.mxu0 }
 0x1b0   :  { %334 = vrot.lane.b32.xlu0 %v1284_v44, %s1713_s13  ;;  %277 = vrot.lane.b32.xlu1 %v1283_v45, %s1701_s3  ;;  %v200_v46 = vld [vmem:[%s2145_s24] sm:$0xff] }
 0x1b1   :  { %v385_v49 = vpop.f32.mrf.mxu0 }
 0x1b2   :  { %v1286_v53 = vpack.c.bf16 %v385_v49, %v385_v49 }
 0x1b3   :  { %v1342_v54 = vpop.f32.mrf.mxu0 }
 0x1b4   :  { %336 = vrot.lane.b32.xlu1 %v1285_v52, %s1713_s13  ;;  %398 = vrot.lane.b32.xlu0 %v1286_v53, %s1714_s22 }
 0x1b5   :  { %v388_v56 = vpop.f32.mrf.mxu0 }
 0x1b6   :  { %v1287_v58 = vpack.c.bf16 %v388_v56, %v388_v56  ;;  %v1445_v56 = vld [vmem:[%s2123_s15 + $0x10] sm:$0xff]  }
 0x1b7   :  { %v1343_v59 = vpop.f32.mrf.mxu0 }
 0x1b8   :  { %400 = vrot.lane.b32.xlu1 %v1287_v58, %s1714_s22  ;;  %415 = vrot.lane.b32.xlu0 %v1288_v55, %s1715_s12  ;;  %v773_v58 = vld [vmem:[#allocation11] sm:$0xff] }
 0x1bc   :  { %417 = vrot.lane.b32.xlu1 %v1289_v60, %s1715_s12 }
 0x21e   :  { %v276_v61 = vpop.permute.xlu0 %275 }
 0x21f   :  { %282 = vst.msk [vmem:[#allocation2] sm:$0xf] %vm281_vm12, %v276_v61  ;;  %v1292_v61 = vpack.c.bf16 %v773_v58, %v773_v58 }
 0x222   :  { %v335_v62 = vpop.permute.xlu0 %334  ;;  %v278_v63 = vpop.permute.xlu1 %277 }
 0x223   :  { %341 = vst.msk [vmem:[#allocation2] sm:$0xf] %vm340_vm13, %v335_v62 }
 0x224   :  { %283 = vst.msk [vmem:[#allocation2 + $0x4] sm:$0xf] %vm281_vm12, %v278_v63  ;;  %vm1040_vm12 = vcmask 844352  }
 0x226   :  { %v337_v0 = vpop.permute.xlu1 %336  ;;  %v399_v2 = vpop.permute.xlu0 %398 }
 0x227   :  { %342 = vst.msk [vmem:[#allocation2 + $0x4] sm:$0xf] %vm340_vm13, %v337_v0  ;;  %v1446_v0 = vld [vmem:[%s2123_s15 + $0x8] sm:$0xff]   ;;  %vm1103_vm13 = vcmask 850944  }
 0x228   :  { %405 = vst.msk [vmem:[#allocation2] sm:$0xf] %vm404_vm14, %v399_v2 }
 0x22a   :  { %v401_v3 = vpop.permute.xlu1 %400  ;;  %v416_v4 = vpop.permute.xlu0 %415 }
 0x22b   :  { %406 = vst.msk [vmem:[#allocation2 + $0x4] sm:$0xf] %vm404_vm14, %v401_v3  ;;  %v1447_v3 = vld [vmem:[%s2123_s15] sm:$0xff]  }
 0x22c   :  { %422 = vst.msk [vmem:[#allocation2] sm:$0xf] %vm421_vm15, %v416_v4 }
 0x22e   :  { %v418_v5 = vpop.permute.xlu1 %417 }
 0x22f   :  { %423 = vst.msk [vmem:[#allocation2 + $0x4] sm:$0xf] %vm421_vm15, %v418_v5 }
 0x236   :  { %v1442_v6 = vld [vmem:[#allocation2] sm:$0xff]  }
 0x237   :  { %1353 = vmatmul.mubr.msk.bf16.vlgmr.msra.gmra.mxu1 %vm472_vm1, %v1442_v6 }
 0x238   :  { %1390 = vmatprep.mubr.msk.bf16.mxu1 %vm1712_vm2, %v1711_v1 }
 0x2f7   :  { %v510_v8 = vpop.f32.mrf.mxu1 }
 0x2f8   :  { %v511_v9 = vadd.f32 %v1246_v7, %v510_v8 }
 0x2f9   :  { %v1354_v10 = vpop.f32.mrf.mxu1 }
 0x2fa   :  { %1455 = vtanh.f32 %v511_v9  ;;  %v1253_v21 = vmul.f32 -1.442695, %v511_v9 }
 0x2fb   :  { %v513_v13 = vpop.f32.mrf.mxu1 }
 0x2fc   :  { %v514_v14 = vadd.f32 %v1246_v7, %v513_v13  ;;  %v783_v7 = vld [vmem:[#allocation13] sm:$0xff] }
 0x2fd   :  { %v1355_v15 = vpop.f32.mrf.mxu1 }
 0x2fe   :  { %1457 = vtanh.f32 %v514_v14  ;;  %v1254_v22 = vmul.f32 -1.442695, %v514_v14 }
 0x2ff   :  { %1459 = vpow2.f32 %v1253_v21 }
 0x300   :  { %1461 = vpow2.f32 %v1254_v22 }
 0x307   :  { %v1456_v17 = vpop.eup %1455 }
 0x308   :  { %543 = vrot.lane.b32.xlu0 %v1456_v17, %s1715_s12 }
 0x30b   :  { %v1458_v19 = vpop.eup %1457 }
 0x30c   :  { %533 = vrot.lane.b32.xlu0 %v424_v18, %s1715_s12  ;;  %545 = vrot.lane.b32.xlu1 %v1458_v19, %s1715_s12  ;;  %v1460_v24 = vpop.eup %1459 }
 0x30d   :  { %v523_v26 = vadd.f32 1.0, %v1460_v24  ;;  %v1462_v27 = vpop.eup %1461 }
 0x30e   :  { %v524_v28 = vadd.f32 1.0, %v1462_v27 }
 0x30f   :  { %1463 = vrcp.f32 %v523_v26 }
 0x310   :  { %535 = vrot.lane.b32.xlu1 %v425_v20, %s1715_s12  ;;  %1465 = vrcp.f32 %v524_v28  ;;  %v1261_v20 = vld [vmem:[%s2124_s16] ss:$0 sm:$0xff] }
 0x31c   :  { %v1464_v29 = vpop.eup %1463 }
 0x31d   :  { %v1466_v33 = vpop.eup %1465 }
 0x37a   :  { %v544_v31 = vpop.permute.xlu0 %543 }
 0x37b   :  { %v549_v32 = vmul.f32 %v1464_v29, %v544_v31 }
 0x37d   :  { %553 = vrot.lane.b32.xlu0 %v549_v32, %s1715_s12 }
 0x37e   :  { %v546_v34 = vpop.permute.xlu1 %545  ;;  %v534_v36 = vpop.permute.xlu0 %533 }
 0x37f   :  { %v550_v35 = vmul.f32 %v1466_v33, %v546_v34  ;;  %v539_v37 = vmul.f32 %v1464_v29, %v534_v36 }
 0x381   :  { %555 = vrot.lane.b32.xlu1 %v550_v35, %s1715_s12 }
 0x382   :  { %v536_v38 = vpop.permute.xlu1 %535 }
 0x383   :  { %v540_v41 = vmul.f32 %v1466_v33, %v536_v38 }
 0x3ef   :  { %v554_v39 = vpop.permute.xlu0 %553 }
 0x3f0   :  { %v1957_v40 = vadd.f32 %v554_v39, %v539_v37 }
 0x3f2   :  { %1467 = vtanh.f32 %v1957_v40 }
 0x3f3   :  { %v556_v42 = vpop.permute.xlu1 %555 }
 0x3f4   :  { %v1960_v43 = vadd.f32 %v556_v42, %v540_v41  ;;  %v1718_v42 = vmov 1966171168  }
 0x3f6   :  { %1469 = vtanh.f32 %v1960_v43 }
 0x3ff   :  { %v1468_v44 = vpop.eup %1467 }
 0x400   :  { %565 = vrot.lane.b32.xlu0 %v1468_v44, %s1715_s12  ;;  %v982_v44 = vunpack.c.l.s4 %v1718_v42 }
 0x403   :  { %v1470_v45 = vpop.eup %1469 }
 0x404   :  { %567 = vrot.lane.b32.xlu1 %v1470_v45, %s1715_s12  ;;  %v983_v45 = vunpack.c.0.s8 %v982_v44 }
 0x408   :  { %202 = vperm.xlu1 %1437, %v200_v46   ;;  %v985_v46 = vshrl.u32 %v161_v11, 7 }
 0x42b   :  { %652 = vxpose.xlu1.c.b16.start.end [1/1] (short) (narrow) %v1924_v30, 16 }
 0x472   :  { %v566_v47 = vpop.permute.xlu0 %565 }
 0x473   :  { %v1969_v49 = vmul.f32 %v1464_v29, %v566_v47 }
 0x476   :  { %v568_v48 = vpop.permute.xlu1 %567 }
 0x477   :  { %v1971_v50 = vmul.f32 %v1466_v33, %v568_v48  ;;  %v986_v48 = vsub.s32 %v983_v45, %v985_v46 }
 0x479   :  { %v587_v51 = vpack.c.bf16 %v1971_v50, %v1969_v49 }
 0x47b   :  { %605 = vrot.lane.b32.xlu0 %v587_v51, %s1708_s8 }
 0x483   :  { %v203_v30 = vpop.permute.xlu1 %202 }
 0x484   :  { %vm204_vm4 = vcmp.eq.s32.totalorder %v1891_v12, %v203_v30  ;;  %v1443_v12 = vld [vmem:[%s2123_s15 + $0x20] sm:$0xff]  }
 0x48d   :  { %v660_v54 = vpop.trf.xlu1 }
 0x499   :  { %588 = vxpose.xlu0.c.b16.start.end [1/1] (short) (narrow) %v1906_v23, 16  ;;  %v205_v23 = vsel %vm204_vm4, 1.0, %v1711_v1 }
 0x49a   :  { %v1987_v55 = vpack.c.bf16 %v205_v23, %v205_v23 }
 0x4ed   :  { %v606_v52 = vpop.permute.xlu0 %605 }
 0x4ee   :  { %1357 = vmatpush3.bf16.msra.mxu0 %v606_v52 }
 0x4ef   :  { %1362 = vmatprep.subr.bf16.mxu0 %v1711_v1 }
 0x4fb   :  { %v596_v53 = vpop.trf.xlu0 }
 0x4fc   :  { %1359 = vmatmul.mubr.msk.bf16.vlgmr.msra.gmra.mxu0 %vm608_vm3, %v596_v53  ;;  %v1020_v53 = vld [vmem:[%s2119_s11] sm:$0x3] }
 0x4fd   :  { %1363 = vmatpush3.bf16.msra.mxu0 %v606_v52  ;;  %1364 = vmatprep.mubr.msk.bf16.mxu0 %vm1712_vm2, %v1711_v1  ;;  %v1021_v11 = vpack.c.bf16 %v1020_v53, %v1020_v53 }
 0x4fe   :  { %1368 = vmatprep.subr.bf16.mxu0 %v1711_v1 }
 0x504   :  { %1365 = vmatmul.mubr.msk.bf16.vlgmr.msra.gmra.mxu0 %vm608_vm3, %v660_v54  ;;  %v1007_v54 = vrot.slane %v1898_v16, %v986_v48  ;;  %v1448_v16 = vld [vmem:[%s2125_s17 + $0x30] ss:$0 sps:$4 sm:$0xff]  }
 0x505   :  { %1369 = vmatpush3.bf16.msra.mxu0 %v1909_v25  ;;  %1370 = vmatprep.mubr.msk.bf16.mxu0 %vm1712_vm2, %v1711_v1  ;;  %v1444_v25 = vld [vmem:[%s2123_s15 + $0x18] sm:$0xff]  }
 0x506   :  { %1374 = vmatprep.subr.bf16.mxu0 %v1711_v1 }
 0x50c   :  { %1371 = vmatmul.mubr.msk.bf16.vlgmr.msra.gmra.mxu0 %vm343_vm11, %v1987_v55  ;;  %vm584_vm11 = vcmask 523520  }
 0x50d   :  { %1384 = vmatprep.mubr.msk.bf16.mxu0 %vm1712_vm2, %v1711_v1  ;;  %1375 = vmatpush3.bf16.msra.mxu0 %v1443_v12  ;;  %v1029_v12 = vrot.slane %v1021_v11, %v986_v48 }
 0x50e   :  { %1376 = vmatprep.subr.bf16.mxu0 %v1711_v1 }
 0x511   :  { %1377 = vmatpush3.bf16.msra.mxu0 %v1444_v25  ;;  %v1036_v25 = vrot.slane %v1029_v12, %v986_v48 }
 0x512   :  { %1378 = vmatprep.subr.bf16.mxu0 %v1711_v1 }
 0x515   :  { %1379 = vmatpush3.bf16.msra.mxu0 %v1445_v56 }
 0x516   :  { %1380 = vmatprep.subr.bf16.mxu0 %v1711_v1 }
 0x519   :  { %1381 = vmatpush3.bf16.msra.mxu0 %v1446_v0  ;;  %v1453_v0 = vld [vmem:[%s2125_s17 + $0x8] sm:$0xff]  }
 0x51a   :  { %1382 = vmatprep.subr.bf16.mxu0 %v1711_v1 }
 0x51d   :  { %1383 = vmatpush3.bf16.msra.mxu0 %v1447_v3 }
 0x5bc   :  { %v646_v57 = vpop.f32.mrf.mxu0 }
 0x5bd   :  { %v1290_v59 = vpack.c.bf16 %v646_v57, %v646_v57 }
 0x5be   :  { %v1360_v60 = vpop.f32.mrf.mxu0 }
 0x5bf   :  { %716 = vrot.lane.b32.xlu0 %v1290_v59, %s1701_s3  ;;  %v1108_v60 = vsel %vm224_vm0, %v1448_v16, 0 }
 0x5c0   :  { %v649_v62 = vpop.f32.mrf.mxu0 }
 0x5c1   :  { %v1451_v62 = vld [vmem:[%s2125_s17 + $0x18] sm:$0xff]  }
 0x5c2   :  { %v1361_v63 = vpop.f32.mrf.mxu0 }
 0x5c3   :  { %778 = vrot.lane.b32.xlu0 %v1292_v61, %s1716_s0  ;;  %v1449_v61 = vld [vmem:[%s2125_s17 + $0x28] sm:$0xff]   ;;  %v1452_v63 = vld [vmem:[%s2125_s17 + $0x10] sm:$0xff]  }
 0x5c4   :  { %v2009_v2 = vpop.f32.mrf.mxu0 }
 0x5c5   :  { %v979_v47 = vpack.c.bf16 %v2009_v2, %v2009_v2  ;;  %v1454_v2 = vld [vmem:[%s2125_s17] sm:$0xff]  }
 0x5c6   :  { %v1366_v4 = vpop.f32.mrf.mxu0 }
 0x5c7   :  { %884 = vrot.lane.b32.xlu0 %v783_v7, %s1715_s12  ;;  %v987_v30 = vrot.slane %v979_v47, %v986_v48 }
 0x5c8   :  { %v708_v5 = vpop.f32.mrf.mxu0 }
 0x5c9   :  { %v994_v23 = vrot.slane %v987_v30, %v986_v48 }
 0x5ca   :  { %v1367_v6 = vpop.f32.mrf.mxu0 }
 0x5cc   :  { %v758_v8 = vpop.f32.mrf.mxu0 }
 0x5cd   :  { %v1291_v9 = vpack.c.bf16 %v758_v8, %v758_v8 }
 0x5ce   :  { %v1372_v10 = vpop.f32.mrf.mxu0 }
 0x5cf   :  { %768 = vrot.lane.b32.xlu1 %v1291_v9, %s1717_s30  ;;  %s1721_s30 = smov [#allocation17]  }
 0x5d0   :  { %v761_v13 = vpop.f32.mrf.mxu0  ;;  %s1191_s15 = sshll.u32 %s1721_s30, 4  ;;  %s1192_s15 = int_to_ptr.vmem [resolvable:$true] %s1191_s15 }
 0x5d2   :  { %v1373_v14 = vpop.f32.mrf.mxu0 }
 0x631   :  { %v717_v15 = vpop.permute.xlu0 %716 }
 0x632   :  { %720 = vst.msk [vmem:[#allocation3] sm:$0xf] %vm719_vm5, %v717_v15 }
 0x635   :  { %v779_v17 = vpop.permute.xlu0 %778 }
 0x639   :  { %v885_v36 = vpop.permute.xlu0 %884 }
 0x641   :  { %v769_v18 = vpop.permute.xlu1 %768 }
 0x642   :  { %772 = vst.msk [vmem:[#allocation3] sm:$0xf] %vm771_vm6, %v769_v18 }
 0x643   :  { %782 = vst.msk [vmem:[#allocation3] sm:$0xf] %vm781_vm7, %v779_v17 }
 0x64a   :  { %v784_v19 = vld [vmem:[#allocation3] sm:$0xf] }
 0x64b   :  { %1385 = vmatmul.mubr.msk.bf16.vlgmr.msra.gmra.mxu0 %vm832_vm9, %v784_v19 }
 0x70b   :  { %v870_v21 = vpop.f32.mrf.mxu0 }
 0x70c   :  { %v871_v22 = vadd.f32 %v1261_v20, %v870_v21  ;;  %v1042_v21 = vld [vmem:[#allocation14] sm:$0x3] }
 0x70d   :  { %v1386_v24 = vpop.f32.mrf.mxu0 }
 0x70e   :  { %1471 = vtanh.f32 %v871_v22  ;;  %v1268_v29 = vmul.f32 -1.442695, %v871_v22 }
 0x70f   :  { %v873_v26 = vpop.f32.mrf.mxu0 }
 0x710   :  { %1473 = vpow2.f32 %v1268_v29 }
 0x711   :  { %v1387_v27 = vpop.f32.mrf.mxu0 }
 0x71b   :  { %v1472_v28 = vpop.eup %1471 }
 0x71c   :  { %889 = vrot.lane.b32.xlu1 %v1472_v28, %s1715_s12 }
 0x71d   :  { %v1474_v31 = vpop.eup %1473 }
 0x71e   :  { %v879_v32 = vadd.f32 1.0, %v1474_v31 }
 0x720   :  { %1475 = vrcp.f32 %v879_v32 }
 0x72d   :  { %v1476_v33 = vpop.eup %1475 }
 0x72e   :  { %v887_v37 = vmul.f32 %v1476_v33, %v885_v36 }
 0x78e   :  { %v890_v34 = vpop.permute.xlu1 %889 }
 0x78f   :  { %v892_v35 = vmul.f32 %v1476_v33, %v890_v34 }
 0x791   :  { %894 = vrot.lane.b32.xlu1 %v892_v35, %s1715_s12 }
 0x803   :  { %v895_v38 = vpop.permute.xlu1 %894 }
 0x804   :  { %v2021_v39 = vadd.f32 %v895_v38, %v887_v37 }
 0x806   :  { %1477 = vtanh.f32 %v2021_v39 }
 0x813   :  { %v1478_v41 = vpop.eup %1477 }
 0x814   :  { %900 = vrot.lane.b32.xlu0 %v1478_v41, %s1715_s12 }
 0x832   :  { %911 = vxpose.xlu0.c.b16.start.end [1/1] (short) (narrow) %v1987_v55, 16  ;;  %v1014_v55 = vrot.slane %v1007_v54, %v986_v48 }
 0x83b   :  { %575 = vrot.lane.b32.xlu0 %v1969_v49, %s1708_s8 }
 0x886   :  { %v901_v51 = vpop.permute.xlu0 %900 }
 0x887   :  { %v2031_v52 = vmul.f32 %v1476_v33, %v901_v51 }
 0x889   :  { %v910_v49 = vpack.c.bf16 %v2031_v52, %v2031_v52 }
 0x88b   :  { %928 = vrot.lane.b32.xlu1 %v910_v49, %s1708_s8 }
 0x88f   :  { %995 = vrot.lane.b32.xlu1 %v994_v23, %s1715_s12 }
 0x893   :  { %1015 = vrot.lane.b32.xlu1 %v1014_v55, %s1708_s8 }
 0x894   :  { %v919_v56 = vpop.trf.xlu0 }
 0x897   :  { %1037 = vrot.lane.b32.xlu1 %v1036_v25, %s1719_s5 }
 0x8ad   :  { %v576_v57 = vpop.permute.xlu0 %575 }
 0x8ae   :  { %582 = vst.msk [vmem:[#allocation17] sm:$0xff] %vm581_vm10, %v576_v57 }
 0x8af   :  { %585 = vst.msk [vmem:[#allocation17] sm:$0xff] %vm584_vm11, %v1957_v40  ;;  %v1450_v40 = vld [vmem:[%s2125_s17 + $0x20] sm:$0xff]  }
 0x8fd   :  { %v929_v58 = vpop.permute.xlu1 %928 }
 0x8fe   :  { %v934_v59 = vsel %vm224_vm0, %v929_v58, 0  ;;  %vm977_vm0 = vcmask 253952  }
 0x8ff   :  { %1389 = vmatpush3.bf16.msra.mxu1 %v934_v59 }
 0x900   :  { %1394 = vmatprep.subr.bf16.mxu1 %v1711_v1 }
 0x901   :  { %v996_v3 = vpop.permute.xlu1 %995 }
 0x902   :  { %1391 = vmatmul.mubr.msk.bf16.vlgmr.msra.gmra.mxu1 %vm220_vm8, %v919_v56  ;;  %vm1018_vm8 = vcmask 582144  }
 0x903   :  { %1395 = vmatpush3.bf16.msra.mxu1 %v1108_v60  ;;  %1408 = vmatprep.mubr.msk.bf16.mxu1 %vm1712_vm2, %v1711_v1  ;;  %vm998_vm2 = vcmask 516352  }
 0x904   :  { %1396 = vmatprep.subr.bf16.mxu1 %v1711_v1 }
 0x905   :  { %v1016_v4 = vpop.permute.xlu1 %1015 }
 0x907   :  { %1397 = vmatpush3.bf16.msra.mxu1 %v1449_v61 }
 0x908   :  { %1398 = vmatprep.subr.bf16.mxu1 %v1711_v1 }
 0x909   :  { %v1038_v8 = vpop.permute.xlu1 %1037 }
 0x90b   :  { %1399 = vmatpush3.bf16.msra.mxu1 %v1450_v40 }
 0x90c   :  { %1400 = vmatprep.subr.bf16.mxu1 %v1711_v1 }
 0x90f   :  { %1401 = vmatpush3.bf16.msra.mxu1 %v1451_v62 }
 0x910   :  { %1402 = vmatprep.subr.bf16.mxu1 %v1711_v1 }
 0x913   :  { %1403 = vmatpush3.bf16.msra.mxu1 %v1452_v63 }
 0x914   :  { %1404 = vmatprep.subr.bf16.mxu1 %v1711_v1 }
 0x917   :  { %1405 = vmatpush3.bf16.msra.mxu1 %v1453_v0 }
 0x918   :  { %1406 = vmatprep.subr.bf16.mxu1 %v1711_v1  ;;  %v1270_v1 = vld [vmem:[%s2126_s18] ss:$0 sm:$0xff]  ;;  %s1720_s18 = smov [#allocation18]  }
 0x919   :  { %s1204_s4 = sshll.u32 %s1720_s18, 4  ;;  %s1205_s4 = int_to_ptr.vmem [resolvable:$true] %s1204_s4 }
 0x91a   :  { %p1632_p8 = scmp.lt.s32.totalorder %s1205_s4, %s1205_s4 }
 0x91b   :  { %1407 = vmatpush3.bf16.msra.mxu1 %v1454_v2 }
 0x9c2   :  { %v970_v5 = vpop.f32.mrf.mxu1 }
 0x9c3   :  { %v976_v6 = vpack.c.bf16 %v970_v5, %v970_v5 }
 0x9c4   :  { %v1392_v7 = vpop.f32.mrf.mxu1 }
 0x9c5   :  { %978 = vst.msk [vmem:[#allocation4] sm:$0x1] %vm977_vm0, %v976_v6 }
 0x9c6   :  { %999 = vst.msk [vmem:[#allocation4] sm:$0x1] %vm998_vm2, %v996_v3  ;;  %v973_v9 = vpop.f32.mrf.mxu1 }
 0x9c7   :  { %1019 = vst.msk [vmem:[#allocation4] sm:$0x1] %vm1018_vm8, %v1016_v4 }
 0x9c8   :  { %1041 = vst.msk [vmem:[#allocation4] sm:$0x1] %vm1040_vm12, %v1038_v8  ;;  %v1393_v10 = vpop.f32.mrf.mxu1 }
 0x9cf   :  { %v1043_v13 = vld [vmem:[#allocation4] sm:$0x1] }
 0x9d0   :  { %1409 = vmatmul.mubr.msk.bf16.vlgmr.msra.gmra.mxu1 %vm1103_vm13, %v1043_v13 }
 0xa90   :  { %v1144_v14 = vpop.f32.mrf.mxu1 }
 0xa91   :  { %v1145_v15 = vadd.f32 %v1270_v1, %v1144_v14 }
 0xa92   :  { %v1410_v17 = vpop.f32.mrf.mxu1 }
 0xa93   :  { %1479 = vtanh.f32 %v1145_v15  ;;  %v1279_v22 = vmul.f32 -1.442695, %v1145_v15 }
 0xa94   :  { %v1147_v18 = vpop.f32.mrf.mxu1 }
 0xa95   :  { %1481 = vpow2.f32 %v1279_v22 }
 0xa96   :  { %v1411_v19 = vpop.f32.mrf.mxu1 }
 0xaa0   :  { %v1480_v20 = vpop.eup %1479 }
 0xaa1   :  { %1163 = vrot.lane.b32.xlu1 %v1480_v20, %s1715_s12 }
 0xaa2   :  { %v1482_v24 = vpop.eup %1481 }
 0xaa3   :  { %v1153_v26 = vadd.f32 1.0, %v1482_v24 }
 0xaa5   :  { %1158 = vrot.lane.b32.xlu1 %v1042_v21, %s1715_s12  ;;  %1483 = vrcp.f32 %v1153_v26 }
 0xab2   :  { %v1484_v27 = vpop.eup %1483 }
 0xb13   :  { %v1164_v28 = vpop.permute.xlu1 %1163 }
 0xb14   :  { %v1166_v29 = vmul.f32 %v1484_v27, %v1164_v28 }
 0xb16   :  { %1168 = vrot.lane.b32.xlu1 %v1166_v29, %s1715_s12 }
 0xb17   :  { %v1159_v31 = vpop.permute.xlu1 %1158 }
 0xb18   :  { %v1161_v32 = vmul.f32 %v1484_v27, %v1159_v31 }
 0xb88   :  { %v1169_v33 = vpop.permute.xlu1 %1168 }
 0xb89   :  { %v1171_v34 = vadd.f32 %v1169_v33, %v1161_v32 }
 0xb8b   :  { %1485 = vtanh.f32 %v1171_v34 }
 0xb98   :  { %v1486_v35 = vpop.eup %1485 }
 0xb99   :  { %1174 = vrot.lane.b32.xlu1 %v1486_v35, %s1715_s12  ;;  %s1627_s12 = scalar_lea.vmem %s1205_s4, 128 }
 0xb9a   :  { %p1628_p7 = scmp.ne.s32.totalorder %s1205_s4, %s1627_s12  ;;  %p1633_p9 = scmp.lt.s32.totalorder %s1627_s12, %s1627_s12 }
 0xb9c   :  { %p1634_p10 = por %p1633_p9, %p1632_p8 }
 0xb9d   :  { %905 = vrot.lane.b32.xlu1 %v2031_v52, %s1708_s8 }
 0xb9e   :  { %p1635_p11 = pnand %p1634_p10, %p1628_p7 }
 0xba1   :  { %577 = vrot.lane.b32.xlu1 %v1971_v50, %s1708_s8 }
 0xc0b   :  { %v1175_v36 = vpop.permute.xlu1 %1174 }
 0xc0c   :  { %v1177_v37 = vmul.f32 %v1484_v27, %v1175_v36 }
 0xc0e   :  { %1179 = vrot.lane.b32.xlu1 %v1177_v37, %s1708_s8 }
 0xc0f   :  { %v906_v38 = vpop.permute.xlu1 %905 }
 0xc10   :  { %908 = vst.msk [vmem:[#allocation18] sm:$0xff] %vm581_vm10, %v906_v38 }
 0xc11   :  { %909 = vst.msk [vmem:[#allocation18] sm:$0xff] %vm584_vm11, %v2021_v39 }
 0xc12   :  { %1638 = shalt.err (!%p1635_p11)
}
 0xc13   :  { %1207 = dma.vmem_to_hbm [thread:$0]  %s1205_s4, 128, %s2128_s20, [#allocation19]   ;;  %v578_v50 = vpop.permute.xlu1 %577 }
 0xc14   :  { %583 = vst.msk [vmem:[#allocation17 + $0x8] sm:$0xff] %vm581_vm10, %v578_v50  ;;  %s1647_s8 = scalar_lea.vmem %s1192_s15, 256  ;;  %p1652_p13 = scmp.lt.s32.totalorder %s1192_s15, %s1192_s15 }
 0xc15   :  { %586 = vst.msk [vmem:[#allocation17 + $0x8] sm:$0xff] %vm584_vm11, %v1960_v43  ;;  %p1648_p12 = scmp.ne.s32.totalorder %s1192_s15, %s1647_s8  ;;  %p1653_p0 = scmp.lt.s32.totalorder %s1647_s8, %s1647_s8 }
 0xc17   :  { %p1654_p1 = por %p1653_p0, %p1652_p13 }
 0xc19   :  { %p1655_p2 = pnand %p1654_p1, %p1648_p12 }
 0xc1b   :  { %1658 = shalt.err (!%p1655_p2)
}
 0xc1c   :  { %1197 = dma.vmem_to_hbm [thread:$0]  %s1192_s15, 256, %s2127_s19, [#allocation7], %s1700_s27, %s1700_s27, %s1701_s3   ;;  %vm1182_vm14 = vcmask 254976   ;;  %vm1184_vm15 = vcmask 517376  }
 0xc1d   :  { %s1722_s20 = smov [#allocation20]  }
 0xc1e   :  { %s1214_s11 = sshll.u32 %s1722_s20, 4  ;;  %s1215_s11 = int_to_ptr.vmem [resolvable:$true] %s1214_s11 }
 0xc1f   :  { %s1667_s23 = scalar_lea.vmem %s1215_s11, 32  ;;  %p1672_p4 = scmp.lt.s32.totalorder %s1215_s11, %s1215_s11 }
 0xc20   :  { %p1668_p3 = scmp.ne.s32.totalorder %s1215_s11, %s1667_s23  ;;  %p1673_p5 = scmp.lt.s32.totalorder %s1667_s23, %s1667_s23 }
 0xc22   :  { %p1674_p6 = por %p1673_p5, %p1672_p4 }
 0xc24   :  { %p1675_p7 = pnand %p1674_p6, %p1668_p3 }
 0xc80   :  { %v1180_v39 = vpop.permute.xlu1 %1179 }
 0xc81   :  { %1183 = vst.msk [vmem:[#allocation20] sm:$0x3] %vm1182_vm14, %v1180_v39 }
 0xc82   :  { %1185 = vst.msk [vmem:[#allocation20] sm:$0x3] %vm1184_vm15, %v1171_v34 }
 0xc83   :  { %1678 = shalt.err (!%p1675_p7)
}
 0xc84   :  { %1217 = dma.vmem_to_hbm [thread:$0]  %s1215_s11, 32, %s2129_s21, [#allocation19]  }
 0xc85   :  { %1695 = dma.done.wait [#allocation7], 256  }
 0xc86   :  { %1696 = vsyncadd [#allocation7], 4294967040 }
 0xc87   :  { %1697 = dma.done.wait [#allocation19], 160  }
 0xc88   :  { %1698 = vsyncadd [#allocation19], 4294967136 }
 0xc89   :  { %1227 = vsyncpa [#allocation6], 1 }
 0xc8a   :  { %1228 = vsyncpa [#allocation9], 1 }
 0xc8b   :  { %1229 = vsyncpa [#allocation12], 1 }
 0xc8c   :  { %1230 = vsyncpa [#allocation15], 1 }
 0xc8d   :  { %1231 = vsyncpa [#allocation7], 1 }
 0xc8e   :  { %1232 = vsyncpa [#allocation19], 1 }

</bundles_post_ra>
